<compile_context>
chip_gen: v7x
topology: tpu7x:2x2x1
jax: 0.10.0
libtpu: 0.0.40
codegen_flags: <defaults>
</compile_context>

<pallas_src>
import functools

import jax
import jax.numpy as jnp
import numpy as np
from jax.experimental import pallas as pl
from jax.experimental.pallas import tpu as pltpu

PAD = 0  # mtie.Constants.PAD


# ----------------------------------------------------------------------------
# In-kernel LSTM cell (PyTorch gate order [i, f, g, o]); all math in f32.
# ----------------------------------------------------------------------------
def _lstm_cell(gates, c_prev, H):
    i_g = jax.nn.sigmoid(gates[:, 0 * H:1 * H])
    f_g = jax.nn.sigmoid(gates[:, 1 * H:2 * H])
    g_g = jnp.tanh(gates[:, 2 * H:3 * H])
    o_g = jax.nn.sigmoid(gates[:, 3 * H:4 * H])
    c_new = f_g * c_prev + i_g * g_g
    h_new = o_g * jnp.tanh(c_new)
    return h_new, c_new


# ----------------------------------------------------------------------------
# Fused bidirectional LSTM layer: one kernel invocation, unrolled time loop,
# both directions interleaved. gx* = x @ W_ih^T + (b_ih + b_hh), precomputed.
# ----------------------------------------------------------------------------
def bilstm_layer_kernel(gxf_ref, gxb_ref, whhf_ref, whhb_ref,
                        outf_ref, outb_ref, cf_ref, cb_ref):
    S, B, H4 = gxf_ref.shape
    H = H4 // 4

    wf = whhf_ref[...]           # (H, 4H), resident in VMEM / vregs
    wb = whhb_ref[...]

    h_f = jnp.zeros((B, H), jnp.float32)
    c_f = jnp.zeros((B, H), jnp.float32)
    h_b = jnp.zeros((B, H), jnp.float32)
    c_b = jnp.zeros((B, H), jnp.float32)

    # Static, fully unrolled time loop (S is small); reverse direction reads /
    # writes at S-1-t, so no HBM-level sequence reversal is ever materialized.
    for t in range(S):
        tr = S - 1 - t
        gates_f = gxf_ref[t] + jnp.dot(h_f, wf, preferred_element_type=jnp.float32)
        gates_b = gxb_ref[tr] + jnp.dot(h_b, wb, preferred_element_type=jnp.float32)
        h_f, c_f = _lstm_cell(gates_f, c_f, H)
        h_b, c_b = _lstm_cell(gates_b, c_b, H)
        outf_ref[t] = h_f.astype(outf_ref.dtype)
        outb_ref[tr] = h_b.astype(outb_ref.dtype)

    cf_ref[...] = c_f.astype(cf_ref.dtype)
    cb_ref[...] = c_b.astype(cb_ref.dtype)


def bilstm_layer_pallas(x, params_fwd, params_bwd):
    """x: (S, B, D) f32. params_*: (w_ih (4H,D), w_hh (4H,H), b_ih (4H,), b_hh (4H,))."""
    S, B, D = x.shape
    w_ih_f, w_hh_f, b_ih_f, b_hh_f = params_fwd
    w_ih_b, w_hh_b, b_ih_b, b_hh_b = params_bwd
    H = w_hh_f.shape[1]

    # Hoisted input projection: single batched MXU matmul per direction.
    x2 = x.reshape(S * B, D).astype(jnp.float32)
    gx_f = (x2 @ w_ih_f.T + (b_ih_f + b_hh_f)).reshape(S, B, 4 * H)
    gx_b = (x2 @ w_ih_b.T + (b_ih_b + b_hh_b)).reshape(S, B, 4 * H)

    vmem = pl.BlockSpec(memory_space=pltpu.MemorySpace.VMEM)
    out_f, out_b, c_f, c_b = pl.pallas_call(
        bilstm_layer_kernel,
        out_shape=(
            jax.ShapeDtypeStruct((S, B, H), jnp.float32),
            jax.ShapeDtypeStruct((S, B, H), jnp.float32),
            jax.ShapeDtypeStruct((B, H), jnp.float32),
            jax.ShapeDtypeStruct((B, H), jnp.float32),
        ),
        in_specs=[vmem, vmem, vmem, vmem],
        out_specs=(vmem, vmem, vmem, vmem),
    )(gx_f, gx_b, jnp.transpose(w_hh_f), jnp.transpose(w_hh_b))

    outs = jnp.concatenate([out_f, out_b], axis=-1)    # (S, B, 2H)
    h_f = out_f[-1]                                    # final forward hidden
    h_b = out_b[0]                                     # final backward hidden
    return outs, (h_f, c_f), (h_b, c_b)


# ----------------------------------------------------------------------------
# Unidirectional LSTM layer (used when brnn=False).
# ----------------------------------------------------------------------------
def lstm_layer_kernel(gx_ref, whh_ref, out_ref, c_ref):
    S, B, H4 = gx_ref.shape
    H = H4 // 4
    w = whh_ref[...]
    h = jnp.zeros((B, H), jnp.float32)
    c = jnp.zeros((B, H), jnp.float32)
    for t in range(S):
        gates = gx_ref[t] + jnp.dot(h, w, preferred_element_type=jnp.float32)
        h, c = _lstm_cell(gates, c, H)
        out_ref[t] = h.astype(out_ref.dtype)
    c_ref[...] = c.astype(c_ref.dtype)


def lstm_layer_pallas(x, w_ih, w_hh, b_ih, b_hh):
    S, B, D = x.shape
    H = w_hh.shape[1]
    x2 = x.reshape(S * B, D).astype(jnp.float32)
    gx = (x2 @ w_ih.T + (b_ih + b_hh)).reshape(S, B, 4 * H)

    vmem = pl.BlockSpec(memory_space=pltpu.MemorySpace.VMEM)
    outs, c_n = pl.pallas_call(
        lstm_layer_kernel,
        out_shape=(
            jax.ShapeDtypeStruct((S, B, H), jnp.float32),
            jax.ShapeDtypeStruct((B, H), jnp.float32),
        ),
        in_specs=[vmem, vmem],
        out_specs=(vmem, vmem),
    )(gx, jnp.transpose(w_hh))
    return outs, outs[-1], c_n


# ----------------------------------------------------------------------------
# Encoder forward (embedding lookup + stacked / bidirectional LSTM)
# ----------------------------------------------------------------------------
def encoder_forward(params, input_ids, layers, num_directions):
    # input_ids: (B, S) int32
    emb = jnp.take(params["embedding"], input_ids, axis=0)   # (B, S, D)
    x = jnp.transpose(emb, (1, 0, 2))                        # (S, B, D) == .transpose(0,1)

    h_list, c_list = [], []
    for l in range(layers):
        if num_directions == 2:
            outs, (h_f, c_f), (h_b, c_b) = bilstm_layer_pallas(
                x, params["lstm"][(l, 0)], params["lstm"][(l, 1)])
            h_list += [h_f, h_b]
            c_list += [c_f, c_b]
            x = outs
        else:
            w_ih, w_hh, b_ih, b_hh = params["lstm"][(l, 0)]
            outs, h_n, c_n = lstm_layer_pallas(x, w_ih, w_hh, b_ih, b_hh)
            h_list.append(h_n)
            c_list.append(c_n)
            x = outs
        # TODO(synk): nn.LSTM inter-layer dropout (training-only, stochastic) is skipped.

    h_n = jnp.stack(h_list, axis=0)   # (layers*num_dirs, B, H)
    c_n = jnp.stack(c_list, axis=0)
    return (h_n, c_n), x              # ((h_n, c_n), outputs) — same as PyTorch module


# ----------------------------------------------------------------------------
# Pure-JAX reference (lax.scan) for correctness checking
# ----------------------------------------------------------------------------
def lstm_layer_ref(x, w_ih, w_hh, b_ih, b_hh):
    H = w_hh.shape[1]
    B = x.shape[1]

    def step(carry, x_t):
        h, c = carry
        gates = x_t @ w_ih.T + h @ w_hh.T + b_ih + b_hh
        i_g = jax.nn.sigmoid(gates[:, 0 * H:1 * H])
        f_g = jax.nn.sigmoid(gates[:, 1 * H:2 * H])
        g_g = jnp.tanh(gates[:, 2 * H:3 * H])
        o_g = jax.nn.sigmoid(gates[:, 3 * H:4 * H])
        c_new = f_g * c + i_g * g_g
        h_new = o_g * jnp.tanh(c_new)
        return (h_new, c_new), h_new

    init = (jnp.zeros((B, H), jnp.float32), jnp.zeros((B, H), jnp.float32))
    (h_n, c_n), outs = jax.lax.scan(step, init, x)
    return outs, h_n, c_n


def encoder_forward_ref(params, input_ids, layers, num_directions):
    emb = jnp.take(params["embedding"], input_ids, axis=0)
    x = jnp.transpose(emb, (1, 0, 2))
    h_list, c_list = [], []
    for l in range(layers):
        dir_outs = []
        for d in range(num_directions):
            w_ih, w_hh, b_ih, b_hh = params["lstm"][(l, d)]
            xi = x if d == 0 else x[::-1]
            outs, h_n, c_n = lstm_layer_ref(xi, w_ih, w_hh, b_ih, b_hh)
            if d == 1:
                outs = outs[::-1]
            dir_outs.append(outs)
            h_list.append(h_n)
            c_list.append(c_n)
        x = jnp.concatenate(dir_outs, axis=-1) if num_directions == 2 else dir_outs[0]
    return (jnp.stack(h_list, 0), jnp.stack(c_list, 0)), x


# ----------------------------------------------------------------------------
def init_params(key, vocab_size, word_vec_size, hidden, layers, num_directions):
    keys = jax.random.split(key, 1 + layers * num_directions * 4)
    k = iter(keys)

    emb = 0.1 * jax.random.normal(next(k), (vocab_size, word_vec_size), jnp.float32)
    emb = emb.at[PAD].set(0.0)   # padding_idx row is zero

    lstm = {}
    for l in range(layers):
        d_in = word_vec_size if l == 0 else hidden * num_directions
        for d in range(num_directions):
            w_ih = 0.1 * jax.random.normal(next(k), (4 * hidden, d_in), jnp.float32)
            w_hh = 0.1 * jax.random.normal(next(k), (4 * hidden, hidden), jnp.float32)
            b_ih = 0.1 * jax.random.normal(next(k), (4 * hidden,), jnp.float32)
            b_hh = 0.1 * jax.random.normal(next(k), (4 * hidden,), jnp.float32)
            lstm[(l, d)] = (w_ih, w_hh, b_ih, b_hh)
    return {"embedding": emb, "lstm": lstm}


if __name__ == "__main__":
    # opt: layers=2, brnn=True, rnn_size=64, word_vec_size=32, dicts.size()=50
    LAYERS = 2
    NUM_DIRECTIONS = 2
    RNN_SIZE = 64
    HIDDEN = RNN_SIZE // NUM_DIRECTIONS      # 32
    WORD_VEC = 32
    VOCAB = 50
    BATCH, SEQ = 2, 8

    key = jax.random.PRNGKey(0)
    pkey, ikey = jax.random.split(key)
    params = init_params(pkey, VOCAB, WORD_VEC, HIDDEN, LAYERS, NUM_DIRECTIONS)

    input_ids = jax.random.randint(ikey, (BATCH, SEQ), 0, VOCAB, dtype=jnp.int32)

    fwd = jax.jit(functools.partial(encoder_forward,
                                    layers=LAYERS, num_directions=NUM_DIRECTIONS))
    (h_n, c_n), outputs = fwd(params, input_ids)
    jax.block_until_ready((h_n, c_n, outputs))

    # correctness vs pure-JAX reference
    (h_r, c_r), out_r = encoder_forward_ref(params, input_ids, LAYERS, NUM_DIRECTIONS)
    np.testing.assert_allclose(np.asarray(outputs), np.asarray(out_r), rtol=1e-5, atol=1e-5)
    np.testing.assert_allclose(np.asarray(h_n), np.asarray(h_r), rtol=1e-5, atol=1e-5)
    np.testing.assert_allclose(np.asarray(c_n), np.asarray(c_r), rtol=1e-5, atol=1e-5)

    assert outputs.shape == (SEQ, BATCH, HIDDEN * NUM_DIRECTIONS)
    assert h_n.shape == (LAYERS * NUM_DIRECTIONS, BATCH, HIDDEN)
    assert c_n.shape == (LAYERS * NUM_DIRECTIONS, BATCH, HIDDEN)
    print("KERNEL_OK")
</pallas_src>

<mosaic_0001>
module attributes {stable_mosaic.version = 11 : i64} {
  func.func @bilstm_layer_kernel(%arg0: memref<8x2x128xf32, #tpu.memory_space<vmem>>, %arg1: memref<8x2x128xf32, #tpu.memory_space<vmem>>, %arg2: memref<32x128xf32, #tpu.memory_space<vmem>>, %arg3: memref<32x128xf32, #tpu.memory_space<vmem>>, %arg4: memref<8x2x32xf32, #tpu.memory_space<vmem>>, %arg5: memref<8x2x32xf32, #tpu.memory_space<vmem>>, %arg6: memref<2x32xf32, #tpu.memory_space<vmem>>, %arg7: memref<2x32xf32, #tpu.memory_space<vmem>>) attributes {dimension_semantics = [], scalar_prefetch = 0 : i64, scratch_operands = 0 : i64, tpu.core_type = #tpu.core_type<tc>} {
    %c0 = arith.constant 0 : index
    %c0_0 = arith.constant 0 : index
    %0 = vector.load %arg2[%c0, %c0_0] : memref<32x128xf32, #tpu.memory_space<vmem>>, vector<32x128xf32>
    %c0_1 = arith.constant 0 : index
    %c0_2 = arith.constant 0 : index
    %1 = vector.load %arg3[%c0_1, %c0_2] : memref<32x128xf32, #tpu.memory_space<vmem>>, vector<32x128xf32>
    %cst = arith.constant 0.000000e+00 : f32
    %2 = vector.broadcast %cst : f32 to vector<2x32xf32>
    %cst_3 = arith.constant 0.000000e+00 : f32
    %3 = vector.broadcast %cst_3 : f32 to vector<2x32xf32>
    %cst_4 = arith.constant 0.000000e+00 : f32
    %4 = vector.broadcast %cst_4 : f32 to vector<2x32xf32>
    %cst_5 = arith.constant 0.000000e+00 : f32
    %5 = vector.broadcast %cst_5 : f32 to vector<2x32xf32>
    %c0_6 = arith.constant 0 : index
    %c0_7 = arith.constant 0 : index
    %c0_8 = arith.constant 0 : index
    %6 = vector.load %arg0[%c0_6, %c0_7, %c0_8] : memref<8x2x128xf32, #tpu.memory_space<vmem>>, vector<1x2x128xf32>
    %7 = vector.shape_cast %6 : vector<1x2x128xf32> to vector<2x128xf32>
    %cst_9 = arith.constant dense<0.000000e+00> : vector<2x128xf32>
    %8 = tpu.matmul %2, %0, %cst_9 {dimension_numbers = #tpu.dot_dimension_numbers<[1], [0], [0], [1], [0, 0, 1, 1], [], []>} : vector<2x32xf32>, vector<32x128xf32>, vector<2x128xf32> -> vector<2x128xf32>
    %9 = arith.addf %7, %8 : vector<2x128xf32>
    %c7 = arith.constant 7 : index
    %c0_10 = arith.constant 0 : index
    %c0_11 = arith.constant 0 : index
    %10 = vector.load %arg1[%c7, %c0_10, %c0_11] : memref<8x2x128xf32, #tpu.memory_space<vmem>>, vector<1x2x128xf32>
    %11 = vector.shape_cast %10 : vector<1x2x128xf32> to vector<2x128xf32>
    %cst_12 = arith.constant dense<0.000000e+00> : vector<2x128xf32>
    %12 = tpu.matmul %4, %1, %cst_12 {dimension_numbers = #tpu.dot_dimension_numbers<[1], [0], [0], [1], [0, 0, 1, 1], [], []>} : vector<2x32xf32>, vector<32x128xf32>, vector<2x128xf32> -> vector<2x128xf32>
    %13 = arith.addf %11, %12 : vector<2x128xf32>
    %14 = vector.extract_strided_slice %9 {offsets = [0, 0], sizes = [2, 32], strides = [1, 1]} : vector<2x128xf32> to vector<2x32xf32>
    %15 = arith.negf %14 : vector<2x32xf32>
    %16 = math.exp %15 : vector<2x32xf32>
    %cst_13 = arith.constant 1.000000e+00 : f32
    %17 = vector.broadcast %cst_13 : f32 to vector<2x32xf32>
    %18 = arith.addf %17, %16 : vector<2x32xf32>
    %19 = arith.divf %17, %18 : vector<2x32xf32>
    %20 = vector.extract_strided_slice %9 {offsets = [0, 32], sizes = [2, 32], strides = [1, 1]} : vector<2x128xf32> to vector<2x32xf32>
    %21 = arith.negf %20 : vector<2x32xf32>
    %22 = math.exp %21 : vector<2x32xf32>
    %cst_14 = arith.constant 1.000000e+00 : f32
    %23 = vector.broadcast %cst_14 : f32 to vector<2x32xf32>
    %24 = arith.addf %23, %22 : vector<2x32xf32>
    %25 = arith.divf %23, %24 : vector<2x32xf32>
    %26 = vector.extract_strided_slice %9 {offsets = [0, 64], sizes = [2, 32], strides = [1, 1]} : vector<2x128xf32> to vector<2x32xf32>
    %27 = math.tanh %26 : vector<2x32xf32>
    %28 = vector.extract_strided_slice %9 {offsets = [0, 96], sizes = [2, 32], strides = [1, 1]} : vector<2x128xf32> to vector<2x32xf32>
    %29 = arith.negf %28 : vector<2x32xf32>
    %30 = math.exp %29 : vector<2x32xf32>
    %cst_15 = arith.constant 1.000000e+00 : f32
    %31 = vector.broadcast %cst_15 : f32 to vector<2x32xf32>
    %32 = arith.addf %31, %30 : vector<2x32xf32>
    %33 = arith.divf %31, %32 : vector<2x32xf32>
    %34 = arith.mulf %25, %3 : vector<2x32xf32>
    %35 = arith.mulf %19, %27 : vector<2x32xf32>
    %36 = arith.addf %34, %35 : vector<2x32xf32>
    %37 = math.tanh %36 : vector<2x32xf32>
    %38 = arith.mulf %33, %37 : vector<2x32xf32>
    %39 = vector.extract_strided_slice %13 {offsets = [0, 0], sizes = [2, 32], strides = [1, 1]} : vector<2x128xf32> to vector<2x32xf32>
    %40 = arith.negf %39 : vector<2x32xf32>
    %41 = math.exp %40 : vector<2x32xf32>
    %cst_16 = arith.constant 1.000000e+00 : f32
    %42 = vector.broadcast %cst_16 : f32 to vector<2x32xf32>
    %43 = arith.addf %42, %41 : vector<2x32xf32>
    %44 = arith.divf %42, %43 : vector<2x32xf32>
    %45 = vector.extract_strided_slice %13 {offsets = [0, 32], sizes = [2, 32], strides = [1, 1]} : vector<2x128xf32> to vector<2x32xf32>
    %46 = arith.negf %45 : vector<2x32xf32>
    %47 = math.exp %46 : vector<2x32xf32>
    %cst_17 = arith.constant 1.000000e+00 : f32
    %48 = vector.broadcast %cst_17 : f32 to vector<2x32xf32>
    %49 = arith.addf %48, %47 : vector<2x32xf32>
    %50 = arith.divf %48, %49 : vector<2x32xf32>
    %51 = vector.extract_strided_slice %13 {offsets = [0, 64], sizes = [2, 32], strides = [1, 1]} : vector<2x128xf32> to vector<2x32xf32>
    %52 = math.tanh %51 : vector<2x32xf32>
    %53 = vector.extract_strided_slice %13 {offsets = [0, 96], sizes = [2, 32], strides = [1, 1]} : vector<2x128xf32> to vector<2x32xf32>
    %54 = arith.negf %53 : vector<2x32xf32>
    %55 = math.exp %54 : vector<2x32xf32>
    %cst_18 = arith.constant 1.000000e+00 : f32
    %56 = vector.broadcast %cst_18 : f32 to vector<2x32xf32>
    %57 = arith.addf %56, %55 : vector<2x32xf32>
    %58 = arith.divf %56, %57 : vector<2x32xf32>
    %59 = arith.mulf %50, %5 : vector<2x32xf32>
    %60 = arith.mulf %44, %52 : vector<2x32xf32>
    %61 = arith.addf %59, %60 : vector<2x32xf32>
    %62 = math.tanh %61 : vector<2x32xf32>
    %63 = arith.mulf %58, %62 : vector<2x32xf32>
    %c0_19 = arith.constant 0 : index
    %c0_20 = arith.constant 0 : index
    %c0_21 = arith.constant 0 : index
    %64 = vector.load %arg4[%c0_19, %c0_20, %c0_21] : memref<8x2x32xf32, #tpu.memory_space<vmem>>, vector<1x2x32xf32>
    %65 = vector.shape_cast %64 : vector<1x2x32xf32> to vector<2x32xf32>
    %66 = vector.shape_cast %38 : vector<2x32xf32> to vector<1x2x32xf32>
    tpu.vector_store %arg4[%c0_19, %c0_20, %c0_21], %66 {strides = array<i32>} : memref<8x2x32xf32, #tpu.memory_space<vmem>>, vector<1x2x32xf32>,
    %c7_22 = arith.constant 7 : index
    %c0_23 = arith.constant 0 : index
    %c0_24 = arith.constant 0 : index
    %67 = vector.load %arg5[%c7_22, %c0_23, %c0_24] : memref<8x2x32xf32, #tpu.memory_space<vmem>>, vector<1x2x32xf32>
    %68 = vector.shape_cast %67 : vector<1x2x32xf32> to vector<2x32xf32>
    %69 = vector.shape_cast %63 : vector<2x32xf32> to vector<1x2x32xf32>
    tpu.vector_store %arg5[%c7_22, %c0_23, %c0_24], %69 {strides = array<i32>} : memref<8x2x32xf32, #tpu.memory_space<vmem>>, vector<1x2x32xf32>,
    %c1 = arith.constant 1 : index
    %c0_25 = arith.constant 0 : index
    %c0_26 = arith.constant 0 : index
    %70 = vector.load %arg0[%c1, %c0_25, %c0_26] : memref<8x2x128xf32, #tpu.memory_space<vmem>>, vector<1x2x128xf32>
    %71 = vector.shape_cast %70 : vector<1x2x128xf32> to vector<2x128xf32>
    %cst_27 = arith.constant dense<0.000000e+00> : vector<2x128xf32>
    %72 = tpu.matmul %38, %0, %cst_27 {dimension_numbers = #tpu.dot_dimension_numbers<[1], [0], [0], [1], [0, 0, 1, 1], [], []>} : vector<2x32xf32>, vector<32x128xf32>, vector<2x128xf32> -> vector<2x128xf32>
    %73 = arith.addf %71, %72 : vector<2x128xf32>
    %c6 = arith.constant 6 : index
    %c0_28 = arith.constant 0 : index
    %c0_29 = arith.constant 0 : index
    %74 = vector.load %arg1[%c6, %c0_28, %c0_29] : memref<8x2x128xf32, #tpu.memory_space<vmem>>, vector<1x2x128xf32>
    %75 = vector.shape_cast %74 : vector<1x2x128xf32> to vector<2x128xf32>
    %cst_30 = arith.constant dense<0.000000e+00> : vector<2x128xf32>
    %76 = tpu.matmul %63, %1, %cst_30 {dimension_numbers = #tpu.dot_dimension_numbers<[1], [0], [0], [1], [0, 0, 1, 1], [], []>} : vector<2x32xf32>, vector<32x128xf32>, vector<2x128xf32> -> vector<2x128xf32>
    %77 = arith.addf %75, %76 : vector<2x128xf32>
    %78 = vector.extract_strided_slice %73 {offsets = [0, 0], sizes = [2, 32], strides = [1, 1]} : vector<2x128xf32> to vector<2x32xf32>
    %79 = arith.negf %78 : vector<2x32xf32>
    %80 = math.exp %79 : vector<2x32xf32>
    %cst_31 = arith.constant 1.000000e+00 : f32
    %81 = vector.broadcast %cst_31 : f32 to vector<2x32xf32>
    %82 = arith.addf %81, %80 : vector<2x32xf32>
    %83 = arith.divf %81, %82 : vector<2x32xf32>
    %84 = vector.extract_strided_slice %73 {offsets = [0, 32], sizes = [2, 32], strides = [1, 1]} : vector<2x128xf32> to vector<2x32xf32>
    %85 = arith.negf %84 : vector<2x32xf32>
    %86 = math.exp %85 : vector<2x32xf32>
    %cst_32 = arith.constant 1.000000e+00 : f32
    %87 = vector.broadcast %cst_32 : f32 to vector<2x32xf32>
    %88 = arith.addf %87, %86 : vector<2x32xf32>
    %89 = arith.divf %87, %88 : vector<2x32xf32>
    %90 = vector.extract_strided_slice %73 {offsets = [0, 64], sizes = [2, 32], strides = [1, 1]} : vector<2x128xf32> to vector<2x32xf32>
    %91 = math.tanh %90 : vector<2x32xf32>
    %92 = vector.extract_strided_slice %73 {offsets = [0, 96], sizes = [2, 32], strides = [1, 1]} : vector<2x128xf32> to vector<2x32xf32>
    %93 = arith.negf %92 : vector<2x32xf32>
    %94 = math.exp %93 : vector<2x32xf32>
    %cst_33 = arith.constant 1.000000e+00 : f32
    %95 = vector.broadcast %cst_33 : f32 to vector<2x32xf32>
    %96 = arith.addf %95, %94 : vector<2x32xf32>
    %97 = arith.divf %95, %96 : vector<2x32xf32>
    %98 = arith.mulf %89, %36 : vector<2x32xf32>
    %99 = arith.mulf %83, %91 : vector<2x32xf32>
    %100 = arith.addf %98, %99 : vector<2x32xf32>
    %101 = math.tanh %100 : vector<2x32xf32>
    %102 = arith.mulf %97, %101 : vector<2x32xf32>
    %103 = vector.extract_strided_slice %77 {offsets = [0, 0], sizes = [2, 32], strides = [1, 1]} : vector<2x128xf32> to vector<2x32xf32>
    %104 = arith.negf %103 : vector<2x32xf32>
    %105 = math.exp %104 : vector<2x32xf32>
    %cst_34 = arith.constant 1.000000e+00 : f32
    %106 = vector.broadcast %cst_34 : f32 to vector<2x32xf32>
    %107 = arith.addf %106, %105 : vector<2x32xf32>
    %108 = arith.divf %106, %107 : vector<2x32xf32>
    %109 = vector.extract_strided_slice %77 {offsets = [0, 32], sizes = [2, 32], strides = [1, 1]} : vector<2x128xf32> to vector<2x32xf32>
    %110 = arith.negf %109 : vector<2x32xf32>
    %111 = math.exp %110 : vector<2x32xf32>
    %cst_35 = arith.constant 1.000000e+00 : f32
    %112 = vector.broadcast %cst_35 : f32 to vector<2x32xf32>
    %113 = arith.addf %112, %111 : vector<2x32xf32>
    %114 = arith.divf %112, %113 : vector<2x32xf32>
    %115 = vector.extract_strided_slice %77 {offsets = [0, 64], sizes = [2, 32], strides = [1, 1]} : vector<2x128xf32> to vector<2x32xf32>
    %116 = math.tanh %115 : vector<2x32xf32>
    %117 = vector.extract_strided_slice %77 {offsets = [0, 96], sizes = [2, 32], strides = [1, 1]} : vector<2x128xf32> to vector<2x32xf32>
    %118 = arith.negf %117 : vector<2x32xf32>
    %119 = math.exp %118 : vector<2x32xf32>
    %cst_36 = arith.constant 1.000000e+00 : f32
    %120 = vector.broadcast %cst_36 : f32 to vector<2x32xf32>
    %121 = arith.addf %120, %119 : vector<2x32xf32>
    %122 = arith.divf %120, %121 : vector<2x32xf32>
    %123 = arith.mulf %114, %61 : vector<2x32xf32>
    %124 = arith.mulf %108, %116 : vector<2x32xf32>
    %125 = arith.addf %123, %124 : vector<2x32xf32>
    %126 = math.tanh %125 : vector<2x32xf32>
    %127 = arith.mulf %122, %126 : vector<2x32xf32>
    %c1_37 = arith.constant 1 : index
    %c0_38 = arith.constant 0 : index
    %c0_39 = arith.constant 0 : index
    %128 = vector.load %arg4[%c1_37, %c0_38, %c0_39] : memref<8x2x32xf32, #tpu.memory_space<vmem>>, vector<1x2x32xf32>
    %129 = vector.shape_cast %128 : vector<1x2x32xf32> to vector<2x32xf32>
    %130 = vector.shape_cast %102 : vector<2x32xf32> to vector<1x2x32xf32>
    tpu.vector_store %arg4[%c1_37, %c0_38, %c0_39], %130 {strides = array<i32>} : memref<8x2x32xf32, #tpu.memory_space<vmem>>, vector<1x2x32xf32>,
    %c6_40 = arith.constant 6 : index
    %c0_41 = arith.constant 0 : index
    %c0_42 = arith.constant 0 : index
    %131 = vector.load %arg5[%c6_40, %c0_41, %c0_42] : memref<8x2x32xf32, #tpu.memory_space<vmem>>, vector<1x2x32xf32>
    %132 = vector.shape_cast %131 : vector<1x2x32xf32> to vector<2x32xf32>
    %133 = vector.shape_cast %127 : vector<2x32xf32> to vector<1x2x32xf32>
    tpu.vector_store %arg5[%c6_40, %c0_41, %c0_42], %133 {strides = array<i32>} : memref<8x2x32xf32, #tpu.memory_space<vmem>>, vector<1x2x32xf32>,
    %c2 = arith.constant 2 : index
    %c0_43 = arith.constant 0 : index
    %c0_44 = arith.constant 0 : index
    %134 = vector.load %arg0[%c2, %c0_43, %c0_44] : memref<8x2x128xf32, #tpu.memory_space<vmem>>, vector<1x2x128xf32>
    %135 = vector.shape_cast %134 : vector<1x2x128xf32> to vector<2x128xf32>
    %cst_45 = arith.constant dense<0.000000e+00> : vector<2x128xf32>
    %136 = tpu.matmul %102, %0, %cst_45 {dimension_numbers = #tpu.dot_dimension_numbers<[1], [0], [0], [1], [0, 0, 1, 1], [], []>} : vector<2x32xf32>, vector<32x128xf32>, vector<2x128xf32> -> vector<2x128xf32>
    %137 = arith.addf %135, %136 : vector<2x128xf32>
    %c5 = arith.constant 5 : index
    %c0_46 = arith.constant 0 : index
    %c0_47 = arith.constant 0 : index
    %138 = vector.load %arg1[%c5, %c0_46, %c0_47] : memref<8x2x128xf32, #tpu.memory_space<vmem>>, vector<1x2x128xf32>
    %139 = vector.shape_cast %138 : vector<1x2x128xf32> to vector<2x128xf32>
    %cst_48 = arith.constant dense<0.000000e+00> : vector<2x128xf32>
    %140 = tpu.matmul %127, %1, %cst_48 {dimension_numbers = #tpu.dot_dimension_numbers<[1], [0], [0], [1], [0, 0, 1, 1], [], []>} : vector<2x32xf32>, vector<32x128xf32>, vector<2x128xf32> -> vector<2x128xf32>
    %141 = arith.addf %139, %140 : vector<2x128xf32>
    %142 = vector.extract_strided_slice %137 {offsets = [0, 0], sizes = [2, 32], strides = [1, 1]} : vector<2x128xf32> to vector<2x32xf32>
    %143 = arith.negf %142 : vector<2x32xf32>
    %144 = math.exp %143 : vector<2x32xf32>
    %cst_49 = arith.constant 1.000000e+00 : f32
    %145 = vector.broadcast %cst_49 : f32 to vector<2x32xf32>
    %146 = arith.addf %145, %144 : vector<2x32xf32>
    %147 = arith.divf %145, %146 : vector<2x32xf32>
    %148 = vector.extract_strided_slice %137 {offsets = [0, 32], sizes = [2, 32], strides = [1, 1]} : vector<2x128xf32> to vector<2x32xf32>
    %149 = arith.negf %148 : vector<2x32xf32>
    %150 = math.exp %149 : vector<2x32xf32>
    %cst_50 = arith.constant 1.000000e+00 : f32
    %151 = vector.broadcast %cst_50 : f32 to vector<2x32xf32>
    %152 = arith.addf %151, %150 : vector<2x32xf32>
    %153 = arith.divf %151, %152 : vector<2x32xf32>
    %154 = vector.extract_strided_slice %137 {offsets = [0, 64], sizes = [2, 32], strides = [1, 1]} : vector<2x128xf32> to vector<2x32xf32>
    %155 = math.tanh %154 : vector<2x32xf32>
    %156 = vector.extract_strided_slice %137 {offsets = [0, 96], sizes = [2, 32], strides = [1, 1]} : vector<2x128xf32> to vector<2x32xf32>
    %157 = arith.negf %156 : vector<2x32xf32>
    %158 = math.exp %157 : vector<2x32xf32>
    %cst_51 = arith.constant 1.000000e+00 : f32
    %159 = vector.broadcast %cst_51 : f32 to vector<2x32xf32>
    %160 = arith.addf %159, %158 : vector<2x32xf32>
    %161 = arith.divf %159, %160 : vector<2x32xf32>
    %162 = arith.mulf %153, %100 : vector<2x32xf32>
    %163 = arith.mulf %147, %155 : vector<2x32xf32>
    %164 = arith.addf %162, %163 : vector<2x32xf32>
    %165 = math.tanh %164 : vector<2x32xf32>
    %166 = arith.mulf %161, %165 : vector<2x32xf32>
    %167 = vector.extract_strided_slice %141 {offsets = [0, 0], sizes = [2, 32], strides = [1, 1]} : vector<2x128xf32> to vector<2x32xf32>
    %168 = arith.negf %167 : vector<2x32xf32>
    %169 = math.exp %168 : vector<2x32xf32>
    %cst_52 = arith.constant 1.000000e+00 : f32
    %170 = vector.broadcast %cst_52 : f32 to vector<2x32xf32>
    %171 = arith.addf %170, %169 : vector<2x32xf32>
    %172 = arith.divf %170, %171 : vector<2x32xf32>
    %173 = vector.extract_strided_slice %141 {offsets = [0, 32], sizes = [2, 32], strides = [1, 1]} : vector<2x128xf32> to vector<2x32xf32>
    %174 = arith.negf %173 : vector<2x32xf32>
    %175 = math.exp %174 : vector<2x32xf32>
    %cst_53 = arith.constant 1.000000e+00 : f32
    %176 = vector.broadcast %cst_53 : f32 to vector<2x32xf32>
    %177 = arith.addf %176, %175 : vector<2x32xf32>
    %178 = arith.divf %176, %177 : vector<2x32xf32>
    %179 = vector.extract_strided_slice %141 {offsets = [0, 64], sizes = [2, 32], strides = [1, 1]} : vector<2x128xf32> to vector<2x32xf32>
    %180 = math.tanh %179 : vector<2x32xf32>
    %181 = vector.extract_strided_slice %141 {offsets = [0, 96], sizes = [2, 32], strides = [1, 1]} : vector<2x128xf32> to vector<2x32xf32>
    %182 = arith.negf %181 : vector<2x32xf32>
    %183 = math.exp %182 : vector<2x32xf32>
    %cst_54 = arith.constant 1.000000e+00 : f32
    %184 = vector.broadcast %cst_54 : f32 to vector<2x32xf32>
    %185 = arith.addf %184, %183 : vector<2x32xf32>
    %186 = arith.divf %184, %185 : vector<2x32xf32>
    %187 = arith.mulf %178, %125 : vector<2x32xf32>
    %188 = arith.mulf %172, %180 : vector<2x32xf32>
    %189 = arith.addf %187, %188 : vector<2x32xf32>
    %190 = math.tanh %189 : vector<2x32xf32>
    %191 = arith.mulf %186, %190 : vector<2x32xf32>
    %c2_55 = arith.constant 2 : index
    %c0_56 = arith.constant 0 : index
    %c0_57 = arith.constant 0 : index
    %192 = vector.load %arg4[%c2_55, %c0_56, %c0_57] : memref<8x2x32xf32, #tpu.memory_space<vmem>>, vector<1x2x32xf32>
    %193 = vector.shape_cast %192 : vector<1x2x32xf32> to vector<2x32xf32>
    %194 = vector.shape_cast %166 : vector<2x32xf32> to vector<1x2x32xf32>
    tpu.vector_store %arg4[%c2_55, %c0_56, %c0_57], %194 {strides = array<i32>} : memref<8x2x32xf32, #tpu.memory_space<vmem>>, vector<1x2x32xf32>,
    %c5_58 = arith.constant 5 : index
    %c0_59 = arith.constant 0 : index
    %c0_60 = arith.constant 0 : index
    %195 = vector.load %arg5[%c5_58, %c0_59, %c0_60] : memref<8x2x32xf32, #tpu.memory_space<vmem>>, vector<1x2x32xf32>
    %196 = vector.shape_cast %195 : vector<1x2x32xf32> to vector<2x32xf32>
    %197 = vector.shape_cast %191 : vector<2x32xf32> to vector<1x2x32xf32>
    tpu.vector_store %arg5[%c5_58, %c0_59, %c0_60], %197 {strides = array<i32>} : memref<8x2x32xf32, #tpu.memory_space<vmem>>, vector<1x2x32xf32>,
    %c3 = arith.constant 3 : index
    %c0_61 = arith.constant 0 : index
    %c0_62 = arith.constant 0 : index
    %198 = vector.load %arg0[%c3, %c0_61, %c0_62] : memref<8x2x128xf32, #tpu.memory_space<vmem>>, vector<1x2x128xf32>
    %199 = vector.shape_cast %198 : vector<1x2x128xf32> to vector<2x128xf32>
    %cst_63 = arith.constant dense<0.000000e+00> : vector<2x128xf32>
    %200 = tpu.matmul %166, %0, %cst_63 {dimension_numbers = #tpu.dot_dimension_numbers<[1], [0], [0], [1], [0, 0, 1, 1], [], []>} : vector<2x32xf32>, vector<32x128xf32>, vector<2x128xf32> -> vector<2x128xf32>
    %201 = arith.addf %199, %200 : vector<2x128xf32>
    %c4 = arith.constant 4 : index
    %c0_64 = arith.constant 0 : index
    %c0_65 = arith.constant 0 : index
    %202 = vector.load %arg1[%c4, %c0_64, %c0_65] : memref<8x2x128xf32, #tpu.memory_space<vmem>>, vector<1x2x128xf32>
    %203 = vector.shape_cast %202 : vector<1x2x128xf32> to vector<2x128xf32>
    %cst_66 = arith.constant dense<0.000000e+00> : vector<2x128xf32>
    %204 = tpu.matmul %191, %1, %cst_66 {dimension_numbers = #tpu.dot_dimension_numbers<[1], [0], [0], [1], [0, 0, 1, 1], [], []>} : vector<2x32xf32>, vector<32x128xf32>, vector<2x128xf32> -> vector<2x128xf32>
    %205 = arith.addf %203, %204 : vector<2x128xf32>
    %206 = vector.extract_strided_slice %201 {offsets = [0, 0], sizes = [2, 32], strides = [1, 1]} : vector<2x128xf32> to vector<2x32xf32>
    %207 = arith.negf %206 : vector<2x32xf32>
    %208 = math.exp %207 : vector<2x32xf32>
    %cst_67 = arith.constant 1.000000e+00 : f32
    %209 = vector.broadcast %cst_67 : f32 to vector<2x32xf32>
    %210 = arith.addf %209, %208 : vector<2x32xf32>
    %211 = arith.divf %209, %210 : vector<2x32xf32>
    %212 = vector.extract_strided_slice %201 {offsets = [0, 32], sizes = [2, 32], strides = [1, 1]} : vector<2x128xf32> to vector<2x32xf32>
    %213 = arith.negf %212 : vector<2x32xf32>
    %214 = math.exp %213 : vector<2x32xf32>
    %cst_68 = arith.constant 1.000000e+00 : f32
    %215 = vector.broadcast %cst_68 : f32 to vector<2x32xf32>
    %216 = arith.addf %215, %214 : vector<2x32xf32>
    %217 = arith.divf %215, %216 : vector<2x32xf32>
    %218 = vector.extract_strided_slice %201 {offsets = [0, 64], sizes = [2, 32], strides = [1, 1]} : vector<2x128xf32> to vector<2x32xf32>
    %219 = math.tanh %218 : vector<2x32xf32>
    %220 = vector.extract_strided_slice %201 {offsets = [0, 96], sizes = [2, 32], strides = [1, 1]} : vector<2x128xf32> to vector<2x32xf32>
    %221 = arith.negf %220 : vector<2x32xf32>
    %222 = math.exp %221 : vector<2x32xf32>
    %cst_69 = arith.constant 1.000000e+00 : f32
    %223 = vector.broadcast %cst_69 : f32 to vector<2x32xf32>
    %224 = arith.addf %223, %222 : vector<2x32xf32>
    %225 = arith.divf %223, %224 : vector<2x32xf32>
    %226 = arith.mulf %217, %164 : vector<2x32xf32>
    %227 = arith.mulf %211, %219 : vector<2x32xf32>
    %228 = arith.addf %226, %227 : vector<2x32xf32>
    %229 = math.tanh %228 : vector<2x32xf32>
    %230 = arith.mulf %225, %229 : vector<2x32xf32>
    %231 = vector.extract_strided_slice %205 {offsets = [0, 0], sizes = [2, 32], strides = [1, 1]} : vector<2x128xf32> to vector<2x32xf32>
    %232 = arith.negf %231 : vector<2x32xf32>
    %233 = math.exp %232 : vector<2x32xf32>
    %cst_70 = arith.constant 1.000000e+00 : f32
    %234 = vector.broadcast %cst_70 : f32 to vector<2x32xf32>
    %235 = arith.addf %234, %233 : vector<2x32xf32>
    %236 = arith.divf %234, %235 : vector<2x32xf32>
    %237 = vector.extract_strided_slice %205 {offsets = [0, 32], sizes = [2, 32], strides = [1, 1]} : vector<2x128xf32> to vector<2x32xf32>
    %238 = arith.negf %237 : vector<2x32xf32>
    %239 = math.exp %238 : vector<2x32xf32>
    %cst_71 = arith.constant 1.000000e+00 : f32
    %240 = vector.broadcast %cst_71 : f32 to vector<2x32xf32>
    %241 = arith.addf %240, %239 : vector<2x32xf32>
    %242 = arith.divf %240, %241 : vector<2x32xf32>
    %243 = vector.extract_strided_slice %205 {offsets = [0, 64], sizes = [2, 32], strides = [1, 1]} : vector<2x128xf32> to vector<2x32xf32>
    %244 = math.tanh %243 : vector<2x32xf32>
    %245 = vector.extract_strided_slice %205 {offsets = [0, 96], sizes = [2, 32], strides = [1, 1]} : vector<2x128xf32> to vector<2x32xf32>
    %246 = arith.negf %245 : vector<2x32xf32>
    %247 = math.exp %246 : vector<2x32xf32>
    %cst_72 = arith.constant 1.000000e+00 : f32
    %248 = vector.broadcast %cst_72 : f32 to vector<2x32xf32>
    %249 = arith.addf %248, %247 : vector<2x32xf32>
    %250 = arith.divf %248, %249 : vector<2x32xf32>
    %251 = arith.mulf %242, %189 : vector<2x32xf32>
    %252 = arith.mulf %236, %244 : vector<2x32xf32>
    %253 = arith.addf %251, %252 : vector<2x32xf32>
    %254 = math.tanh %253 : vector<2x32xf32>
    %255 = arith.mulf %250, %254 : vector<2x32xf32>
    %c3_73 = arith.constant 3 : index
    %c0_74 = arith.constant 0 : index
    %c0_75 = arith.constant 0 : index
    %256 = vector.load %arg4[%c3_73, %c0_74, %c0_75] : memref<8x2x32xf32, #tpu.memory_space<vmem>>, vector<1x2x32xf32>
    %257 = vector.shape_cast %256 : vector<1x2x32xf32> to vector<2x32xf32>
    %258 = vector.shape_cast %230 : vector<2x32xf32> to vector<1x2x32xf32>
    tpu.vector_store %arg4[%c3_73, %c0_74, %c0_75], %258 {strides = array<i32>} : memref<8x2x32xf32, #tpu.memory_space<vmem>>, vector<1x2x32xf32>,
    %c4_76 = arith.constant 4 : index
    %c0_77 = arith.constant 0 : index
    %c0_78 = arith.constant 0 : index
    %259 = vector.load %arg5[%c4_76, %c0_77, %c0_78] : memref<8x2x32xf32, #tpu.memory_space<vmem>>, vector<1x2x32xf32>
    %260 = vector.shape_cast %259 : vector<1x2x32xf32> to vector<2x32xf32>
    %261 = vector.shape_cast %255 : vector<2x32xf32> to vector<1x2x32xf32>
    tpu.vector_store %arg5[%c4_76, %c0_77, %c0_78], %261 {strides = array<i32>} : memref<8x2x32xf32, #tpu.memory_space<vmem>>, vector<1x2x32xf32>,
    %c4_79 = arith.constant 4 : index
    %c0_80 = arith.constant 0 : index
    %c0_81 = arith.constant 0 : index
    %262 = vector.load %arg0[%c4_79, %c0_80, %c0_81] : memref<8x2x128xf32, #tpu.memory_space<vmem>>, vector<1x2x128xf32>
    %263 = vector.shape_cast %262 : vector<1x2x128xf32> to vector<2x128xf32>
    %cst_82 = arith.constant dense<0.000000e+00> : vector<2x128xf32>
    %264 = tpu.matmul %230, %0, %cst_82 {dimension_numbers = #tpu.dot_dimension_numbers<[1], [0], [0], [1], [0, 0, 1, 1], [], []>} : vector<2x32xf32>, vector<32x128xf32>, vector<2x128xf32> -> vector<2x128xf32>
    %265 = arith.addf %263, %264 : vector<2x128xf32>
    %c3_83 = arith.constant 3 : index
    %c0_84 = arith.constant 0 : index
    %c0_85 = arith.constant 0 : index
    %266 = vector.load %arg1[%c3_83, %c0_84, %c0_85] : memref<8x2x128xf32, #tpu.memory_space<vmem>>, vector<1x2x128xf32>
    %267 = vector.shape_cast %266 : vector<1x2x128xf32> to vector<2x128xf32>
    %cst_86 = arith.constant dense<0.000000e+00> : vector<2x128xf32>
    %268 = tpu.matmul %255, %1, %cst_86 {dimension_numbers = #tpu.dot_dimension_numbers<[1], [0], [0], [1], [0, 0, 1, 1], [], []>} : vector<2x32xf32>, vector<32x128xf32>, vector<2x128xf32> -> vector<2x128xf32>
    %269 = arith.addf %267, %268 : vector<2x128xf32>
    %270 = vector.extract_strided_slice %265 {offsets = [0, 0], sizes = [2, 32], strides = [1, 1]} : vector<2x128xf32> to vector<2x32xf32>
    %271 = arith.negf %270 : vector<2x32xf32>
    %272 = math.exp %271 : vector<2x32xf32>
    %cst_87 = arith.constant 1.000000e+00 : f32
    %273 = vector.broadcast %cst_87 : f32 to vector<2x32xf32>
    %274 = arith.addf %273, %272 : vector<2x32xf32>
    %275 = arith.divf %273, %274 : vector<2x32xf32>
    %276 = vector.extract_strided_slice %265 {offsets = [0, 32], sizes = [2, 32], strides = [1, 1]} : vector<2x128xf32> to vector<2x32xf32>
    %277 = arith.negf %276 : vector<2x32xf32>
    %278 = math.exp %277 : vector<2x32xf32>
    %cst_88 = arith.constant 1.000000e+00 : f32
    %279 = vector.broadcast %cst_88 : f32 to vector<2x32xf32>
    %280 = arith.addf %279, %278 : vector<2x32xf32>
    %281 = arith.divf %279, %280 : vector<2x32xf32>
    %282 = vector.extract_strided_slice %265 {offsets = [0, 64], sizes = [2, 32], strides = [1, 1]} : vector<2x128xf32> to vector<2x32xf32>
    %283 = math.tanh %282 : vector<2x32xf32>
    %284 = vector.extract_strided_slice %265 {offsets = [0, 96], sizes = [2, 32], strides = [1, 1]} : vector<2x128xf32> to vector<2x32xf32>
    %285 = arith.negf %284 : vector<2x32xf32>
    %286 = math.exp %285 : vector<2x32xf32>
    %cst_89 = arith.constant 1.000000e+00 : f32
    %287 = vector.broadcast %cst_89 : f32 to vector<2x32xf32>
    %288 = arith.addf %287, %286 : vector<2x32xf32>
    %289 = arith.divf %287, %288 : vector<2x32xf32>
    %290 = arith.mulf %281, %228 : vector<2x32xf32>
    %291 = arith.mulf %275, %283 : vector<2x32xf32>
    %292 = arith.addf %290, %291 : vector<2x32xf32>
    %293 = math.tanh %292 : vector<2x32xf32>
    %294 = arith.mulf %289, %293 : vector<2x32xf32>
    %295 = vector.extract_strided_slice %269 {offsets = [0, 0], sizes = [2, 32], strides = [1, 1]} : vector<2x128xf32> to vector<2x32xf32>
    %296 = arith.negf %295 : vector<2x32xf32>
    %297 = math.exp %296 : vector<2x32xf32>
    %cst_90 = arith.constant 1.000000e+00 : f32
    %298 = vector.broadcast %cst_90 : f32 to vector<2x32xf32>
    %299 = arith.addf %298, %297 : vector<2x32xf32>
    %300 = arith.divf %298, %299 : vector<2x32xf32>
    %301 = vector.extract_strided_slice %269 {offsets = [0, 32], sizes = [2, 32], strides = [1, 1]} : vector<2x128xf32> to vector<2x32xf32>
    %302 = arith.negf %301 : vector<2x32xf32>
    %303 = math.exp %302 : vector<2x32xf32>
    %cst_91 = arith.constant 1.000000e+00 : f32
    %304 = vector.broadcast %cst_91 : f32 to vector<2x32xf32>
    %305 = arith.addf %304, %303 : vector<2x32xf32>
    %306 = arith.divf %304, %305 : vector<2x32xf32>
    %307 = vector.extract_strided_slice %269 {offsets = [0, 64], sizes = [2, 32], strides = [1, 1]} : vector<2x128xf32> to vector<2x32xf32>
    %308 = math.tanh %307 : vector<2x32xf32>
    %309 = vector.extract_strided_slice %269 {offsets = [0, 96], sizes = [2, 32], strides = [1, 1]} : vector<2x128xf32> to vector<2x32xf32>
    %310 = arith.negf %309 : vector<2x32xf32>
    %311 = math.exp %310 : vector<2x32xf32>
    %cst_92 = arith.constant 1.000000e+00 : f32
    %312 = vector.broadcast %cst_92 : f32 to vector<2x32xf32>
    %313 = arith.addf %312, %311 : vector<2x32xf32>
    %314 = arith.divf %312, %313 : vector<2x32xf32>
    %315 = arith.mulf %306, %253 : vector<2x32xf32>
    %316 = arith.mulf %300, %308 : vector<2x32xf32>
    %317 = arith.addf %315, %316 : vector<2x32xf32>
    %318 = math.tanh %317 : vector<2x32xf32>
    %319 = arith.mulf %314, %318 : vector<2x32xf32>
    %c4_93 = arith.constant 4 : index
    %c0_94 = arith.constant 0 : index
    %c0_95 = arith.constant 0 : index
    %320 = vector.load %arg4[%c4_93, %c0_94, %c0_95] : memref<8x2x32xf32, #tpu.memory_space<vmem>>, vector<1x2x32xf32>
    %321 = vector.shape_cast %320 : vector<1x2x32xf32> to vector<2x32xf32>
    %322 = vector.shape_cast %294 : vector<2x32xf32> to vector<1x2x32xf32>
    tpu.vector_store %arg4[%c4_93, %c0_94, %c0_95], %322 {strides = array<i32>} : memref<8x2x32xf32, #tpu.memory_space<vmem>>, vector<1x2x32xf32>,
    %c3_96 = arith.constant 3 : index
    %c0_97 = arith.constant 0 : index
    %c0_98 = arith.constant 0 : index
    %323 = vector.load %arg5[%c3_96, %c0_97, %c0_98] : memref<8x2x32xf32, #tpu.memory_space<vmem>>, vector<1x2x32xf32>
    %324 = vector.shape_cast %323 : vector<1x2x32xf32> to vector<2x32xf32>
    %325 = vector.shape_cast %319 : vector<2x32xf32> to vector<1x2x32xf32>
    tpu.vector_store %arg5[%c3_96, %c0_97, %c0_98], %325 {strides = array<i32>} : memref<8x2x32xf32, #tpu.memory_space<vmem>>, vector<1x2x32xf32>,
    %c5_99 = arith.constant 5 : index
    %c0_100 = arith.constant 0 : index
    %c0_101 = arith.constant 0 : index
    %326 = vector.load %arg0[%c5_99, %c0_100, %c0_101] : memref<8x2x128xf32, #tpu.memory_space<vmem>>, vector<1x2x128xf32>
    %327 = vector.shape_cast %326 : vector<1x2x128xf32> to vector<2x128xf32>
    %cst_102 = arith.constant dense<0.000000e+00> : vector<2x128xf32>
    %328 = tpu.matmul %294, %0, %cst_102 {dimension_numbers = #tpu.dot_dimension_numbers<[1], [0], [0], [1], [0, 0, 1, 1], [], []>} : vector<2x32xf32>, vector<32x128xf32>, vector<2x128xf32> -> vector<2x128xf32>
    %329 = arith.addf %327, %328 : vector<2x128xf32>
    %c2_103 = arith.constant 2 : index
    %c0_104 = arith.constant 0 : index
    %c0_105 = arith.constant 0 : index
    %330 = vector.load %arg1[%c2_103, %c0_104, %c0_105] : memref<8x2x128xf32, #tpu.memory_space<vmem>>, vector<1x2x128xf32>
    %331 = vector.shape_cast %330 : vector<1x2x128xf32> to vector<2x128xf32>
    %cst_106 = arith.constant dense<0.000000e+00> : vector<2x128xf32>
    %332 = tpu.matmul %319, %1, %cst_106 {dimension_numbers = #tpu.dot_dimension_numbers<[1], [0], [0], [1], [0, 0, 1, 1], [], []>} : vector<2x32xf32>, vector<32x128xf32>, vector<2x128xf32> -> vector<2x128xf32>
    %333 = arith.addf %331, %332 : vector<2x128xf32>
    %334 = vector.extract_strided_slice %329 {offsets = [0, 0], sizes = [2, 32], strides = [1, 1]} : vector<2x128xf32> to vector<2x32xf32>
    %335 = arith.negf %334 : vector<2x32xf32>
    %336 = math.exp %335 : vector<2x32xf32>
    %cst_107 = arith.constant 1.000000e+00 : f32
    %337 = vector.broadcast %cst_107 : f32 to vector<2x32xf32>
    %338 = arith.addf %337, %336 : vector<2x32xf32>
    %339 = arith.divf %337, %338 : vector<2x32xf32>
    %340 = vector.extract_strided_slice %329 {offsets = [0, 32], sizes = [2, 32], strides = [1, 1]} : vector<2x128xf32> to vector<2x32xf32>
    %341 = arith.negf %340 : vector<2x32xf32>
    %342 = math.exp %341 : vector<2x32xf32>
    %cst_108 = arith.constant 1.000000e+00 : f32
    %343 = vector.broadcast %cst_108 : f32 to vector<2x32xf32>
    %344 = arith.addf %343, %342 : vector<2x32xf32>
    %345 = arith.divf %343, %344 : vector<2x32xf32>
    %346 = vector.extract_strided_slice %329 {offsets = [0, 64], sizes = [2, 32], strides = [1, 1]} : vector<2x128xf32> to vector<2x32xf32>
    %347 = math.tanh %346 : vector<2x32xf32>
    %348 = vector.extract_strided_slice %329 {offsets = [0, 96], sizes = [2, 32], strides = [1, 1]} : vector<2x128xf32> to vector<2x32xf32>
    %349 = arith.negf %348 : vector<2x32xf32>
    %350 = math.exp %349 : vector<2x32xf32>
    %cst_109 = arith.constant 1.000000e+00 : f32
    %351 = vector.broadcast %cst_109 : f32 to vector<2x32xf32>
    %352 = arith.addf %351, %350 : vector<2x32xf32>
    %353 = arith.divf %351, %352 : vector<2x32xf32>
    %354 = arith.mulf %345, %292 : vector<2x32xf32>
    %355 = arith.mulf %339, %347 : vector<2x32xf32>
    %356 = arith.addf %354, %355 : vector<2x32xf32>
    %357 = math.tanh %356 : vector<2x32xf32>
    %358 = arith.mulf %353, %357 : vector<2x32xf32>
    %359 = vector.extract_strided_slice %333 {offsets = [0, 0], sizes = [2, 32], strides = [1, 1]} : vector<2x128xf32> to vector<2x32xf32>
    %360 = arith.negf %359 : vector<2x32xf32>
    %361 = math.exp %360 : vector<2x32xf32>
    %cst_110 = arith.constant 1.000000e+00 : f32
    %362 = vector.broadcast %cst_110 : f32 to vector<2x32xf32>
    %363 = arith.addf %362, %361 : vector<2x32xf32>
    %364 = arith.divf %362, %363 : vector<2x32xf32>
    %365 = vector.extract_strided_slice %333 {offsets = [0, 32], sizes = [2, 32], strides = [1, 1]} : vector<2x128xf32> to vector<2x32xf32>
    %366 = arith.negf %365 : vector<2x32xf32>
    %367 = math.exp %366 : vector<2x32xf32>
    %cst_111 = arith.constant 1.000000e+00 : f32
    %368 = vector.broadcast %cst_111 : f32 to vector<2x32xf32>
    %369 = arith.addf %368, %367 : vector<2x32xf32>
    %370 = arith.divf %368, %369 : vector<2x32xf32>
    %371 = vector.extract_strided_slice %333 {offsets = [0, 64], sizes = [2, 32], strides = [1, 1]} : vector<2x128xf32> to vector<2x32xf32>
    %372 = math.tanh %371 : vector<2x32xf32>
    %373 = vector.extract_strided_slice %333 {offsets = [0, 96], sizes = [2, 32], strides = [1, 1]} : vector<2x128xf32> to vector<2x32xf32>
    %374 = arith.negf %373 : vector<2x32xf32>
    %375 = math.exp %374 : vector<2x32xf32>
    %cst_112 = arith.constant 1.000000e+00 : f32
    %376 = vector.broadcast %cst_112 : f32 to vector<2x32xf32>
    %377 = arith.addf %376, %375 : vector<2x32xf32>
    %378 = arith.divf %376, %377 : vector<2x32xf32>
    %379 = arith.mulf %370, %317 : vector<2x32xf32>
    %380 = arith.mulf %364, %372 : vector<2x32xf32>
    %381 = arith.addf %379, %380 : vector<2x32xf32>
    %382 = math.tanh %381 : vector<2x32xf32>
    %383 = arith.mulf %378, %382 : vector<2x32xf32>
    %c5_113 = arith.constant 5 : index
    %c0_114 = arith.constant 0 : index
    %c0_115 = arith.constant 0 : index
    %384 = vector.load %arg4[%c5_113, %c0_114, %c0_115] : memref<8x2x32xf32, #tpu.memory_space<vmem>>, vector<1x2x32xf32>
    %385 = vector.shape_cast %384 : vector<1x2x32xf32> to vector<2x32xf32>
    %386 = vector.shape_cast %358 : vector<2x32xf32> to vector<1x2x32xf32>
    tpu.vector_store %arg4[%c5_113, %c0_114, %c0_115], %386 {strides = array<i32>} : memref<8x2x32xf32, #tpu.memory_space<vmem>>, vector<1x2x32xf32>,
    %c2_116 = arith.constant 2 : index
    %c0_117 = arith.constant 0 : index
    %c0_118 = arith.constant 0 : index
    %387 = vector.load %arg5[%c2_116, %c0_117, %c0_118] : memref<8x2x32xf32, #tpu.memory_space<vmem>>, vector<1x2x32xf32>
    %388 = vector.shape_cast %387 : vector<1x2x32xf32> to vector<2x32xf32>
    %389 = vector.shape_cast %383 : vector<2x32xf32> to vector<1x2x32xf32>
    tpu.vector_store %arg5[%c2_116, %c0_117, %c0_118], %389 {strides = array<i32>} : memref<8x2x32xf32, #tpu.memory_space<vmem>>, vector<1x2x32xf32>,
    %c6_119 = arith.constant 6 : index
    %c0_120 = arith.constant 0 : index
    %c0_121 = arith.constant 0 : index
    %390 = vector.load %arg0[%c6_119, %c0_120, %c0_121] : memref<8x2x128xf32, #tpu.memory_space<vmem>>, vector<1x2x128xf32>
    %391 = vector.shape_cast %390 : vector<1x2x128xf32> to vector<2x128xf32>
    %cst_122 = arith.constant dense<0.000000e+00> : vector<2x128xf32>
    %392 = tpu.matmul %358, %0, %cst_122 {dimension_numbers = #tpu.dot_dimension_numbers<[1], [0], [0], [1], [0, 0, 1, 1], [], []>} : vector<2x32xf32>, vector<32x128xf32>, vector<2x128xf32> -> vector<2x128xf32>
    %393 = arith.addf %391, %392 : vector<2x128xf32>
    %c1_123 = arith.constant 1 : index
    %c0_124 = arith.constant 0 : index
    %c0_125 = arith.constant 0 : index
    %394 = vector.load %arg1[%c1_123, %c0_124, %c0_125] : memref<8x2x128xf32, #tpu.memory_space<vmem>>, vector<1x2x128xf32>
    %395 = vector.shape_cast %394 : vector<1x2x128xf32> to vector<2x128xf32>
    %cst_126 = arith.constant dense<0.000000e+00> : vector<2x128xf32>
    %396 = tpu.matmul %383, %1, %cst_126 {dimension_numbers = #tpu.dot_dimension_numbers<[1], [0], [0], [1], [0, 0, 1, 1], [], []>} : vector<2x32xf32>, vector<32x128xf32>, vector<2x128xf32> -> vector<2x128xf32>
    %397 = arith.addf %395, %396 : vector<2x128xf32>
    %398 = vector.extract_strided_slice %393 {offsets = [0, 0], sizes = [2, 32], strides = [1, 1]} : vector<2x128xf32> to vector<2x32xf32>
    %399 = arith.negf %398 : vector<2x32xf32>
    %400 = math.exp %399 : vector<2x32xf32>
    %cst_127 = arith.constant 1.000000e+00 : f32
    %401 = vector.broadcast %cst_127 : f32 to vector<2x32xf32>
    %402 = arith.addf %401, %400 : vector<2x32xf32>
    %403 = arith.divf %401, %402 : vector<2x32xf32>
    %404 = vector.extract_strided_slice %393 {offsets = [0, 32], sizes = [2, 32], strides = [1, 1]} : vector<2x128xf32> to vector<2x32xf32>
    %405 = arith.negf %404 : vector<2x32xf32>
    %406 = math.exp %405 : vector<2x32xf32>
    %cst_128 = arith.constant 1.000000e+00 : f32
    %407 = vector.broadcast %cst_128 : f32 to vector<2x32xf32>
    %408 = arith.addf %407, %406 : vector<2x32xf32>
    %409 = arith.divf %407, %408 : vector<2x32xf32>
    %410 = vector.extract_strided_slice %393 {offsets = [0, 64], sizes = [2, 32], strides = [1, 1]} : vector<2x128xf32> to vector<2x32xf32>
    %411 = math.tanh %410 : vector<2x32xf32>
    %412 = vector.extract_strided_slice %393 {offsets = [0, 96], sizes = [2, 32], strides = [1, 1]} : vector<2x128xf32> to vector<2x32xf32>
    %413 = arith.negf %412 : vector<2x32xf32>
    %414 = math.exp %413 : vector<2x32xf32>
    %cst_129 = arith.constant 1.000000e+00 : f32
    %415 = vector.broadcast %cst_129 : f32 to vector<2x32xf32>
    %416 = arith.addf %415, %414 : vector<2x32xf32>
    %417 = arith.divf %415, %416 : vector<2x32xf32>
    %418 = arith.mulf %409, %356 : vector<2x32xf32>
    %419 = arith.mulf %403, %411 : vector<2x32xf32>
    %420 = arith.addf %418, %419 : vector<2x32xf32>
    %421 = math.tanh %420 : vector<2x32xf32>
    %422 = arith.mulf %417, %421 : vector<2x32xf32>
    %423 = vector.extract_strided_slice %397 {offsets = [0, 0], sizes = [2, 32], strides = [1, 1]} : vector<2x128xf32> to vector<2x32xf32>
    %424 = arith.negf %423 : vector<2x32xf32>
    %425 = math.exp %424 : vector<2x32xf32>
    %cst_130 = arith.constant 1.000000e+00 : f32
    %426 = vector.broadcast %cst_130 : f32 to vector<2x32xf32>
    %427 = arith.addf %426, %425 : vector<2x32xf32>
    %428 = arith.divf %426, %427 : vector<2x32xf32>
    %429 = vector.extract_strided_slice %397 {offsets = [0, 32], sizes = [2, 32], strides = [1, 1]} : vector<2x128xf32> to vector<2x32xf32>
    %430 = arith.negf %429 : vector<2x32xf32>
    %431 = math.exp %430 : vector<2x32xf32>
    %cst_131 = arith.constant 1.000000e+00 : f32
    %432 = vector.broadcast %cst_131 : f32 to vector<2x32xf32>
    %433 = arith.addf %432, %431 : vector<2x32xf32>
    %434 = arith.divf %432, %433 : vector<2x32xf32>
    %435 = vector.extract_strided_slice %397 {offsets = [0, 64], sizes = [2, 32], strides = [1, 1]} : vector<2x128xf32> to vector<2x32xf32>
    %436 = math.tanh %435 : vector<2x32xf32>
    %437 = vector.extract_strided_slice %397 {offsets = [0, 96], sizes = [2, 32], strides = [1, 1]} : vector<2x128xf32> to vector<2x32xf32>
    %438 = arith.negf %437 : vector<2x32xf32>
    %439 = math.exp %438 : vector<2x32xf32>
    %cst_132 = arith.constant 1.000000e+00 : f32
    %440 = vector.broadcast %cst_132 : f32 to vector<2x32xf32>
    %441 = arith.addf %440, %439 : vector<2x32xf32>
    %442 = arith.divf %440, %441 : vector<2x32xf32>
    %443 = arith.mulf %434, %381 : vector<2x32xf32>
    %444 = arith.mulf %428, %436 : vector<2x32xf32>
    %445 = arith.addf %443, %444 : vector<2x32xf32>
    %446 = math.tanh %445 : vector<2x32xf32>
    %447 = arith.mulf %442, %446 : vector<2x32xf32>
    %c6_133 = arith.constant 6 : index
    %c0_134 = arith.constant 0 : index
    %c0_135 = arith.constant 0 : index
    %448 = vector.load %arg4[%c6_133, %c0_134, %c0_135] : memref<8x2x32xf32, #tpu.memory_space<vmem>>, vector<1x2x32xf32>
    %449 = vector.shape_cast %448 : vector<1x2x32xf32> to vector<2x32xf32>
    %450 = vector.shape_cast %422 : vector<2x32xf32> to vector<1x2x32xf32>
    tpu.vector_store %arg4[%c6_133, %c0_134, %c0_135], %450 {strides = array<i32>} : memref<8x2x32xf32, #tpu.memory_space<vmem>>, vector<1x2x32xf32>,
    %c1_136 = arith.constant 1 : index
    %c0_137 = arith.constant 0 : index
    %c0_138 = arith.constant 0 : index
    %451 = vector.load %arg5[%c1_136, %c0_137, %c0_138] : memref<8x2x32xf32, #tpu.memory_space<vmem>>, vector<1x2x32xf32>
    %452 = vector.shape_cast %451 : vector<1x2x32xf32> to vector<2x32xf32>
    %453 = vector.shape_cast %447 : vector<2x32xf32> to vector<1x2x32xf32>
    tpu.vector_store %arg5[%c1_136, %c0_137, %c0_138], %453 {strides = array<i32>} : memref<8x2x32xf32, #tpu.memory_space<vmem>>, vector<1x2x32xf32>,
    %c7_139 = arith.constant 7 : index
    %c0_140 = arith.constant 0 : index
    %c0_141 = arith.constant 0 : index
    %454 = vector.load %arg0[%c7_139, %c0_140, %c0_141] : memref<8x2x128xf32, #tpu.memory_space<vmem>>, vector<1x2x128xf32>
    %455 = vector.shape_cast %454 : vector<1x2x128xf32> to vector<2x128xf32>
    %cst_142 = arith.constant dense<0.000000e+00> : vector<2x128xf32>
    %456 = tpu.matmul %422, %0, %cst_142 {dimension_numbers = #tpu.dot_dimension_numbers<[1], [0], [0], [1], [0, 0, 1, 1], [], []>} : vector<2x32xf32>, vector<32x128xf32>, vector<2x128xf32> -> vector<2x128xf32>
    %457 = arith.addf %455, %456 : vector<2x128xf32>
    %c0_143 = arith.constant 0 : index
    %c0_144 = arith.constant 0 : index
    %c0_145 = arith.constant 0 : index
    %458 = vector.load %arg1[%c0_143, %c0_144, %c0_145] : memref<8x2x128xf32, #tpu.memory_space<vmem>>, vector<1x2x128xf32>
    %459 = vector.shape_cast %458 : vector<1x2x128xf32> to vector<2x128xf32>
    %cst_146 = arith.constant dense<0.000000e+00> : vector<2x128xf32>
    %460 = tpu.matmul %447, %1, %cst_146 {dimension_numbers = #tpu.dot_dimension_numbers<[1], [0], [0], [1], [0, 0, 1, 1], [], []>} : vector<2x32xf32>, vector<32x128xf32>, vector<2x128xf32> -> vector<2x128xf32>
    %461 = arith.addf %459, %460 : vector<2x128xf32>
    %462 = vector.extract_strided_slice %457 {offsets = [0, 0], sizes = [2, 32], strides = [1, 1]} : vector<2x128xf32> to vector<2x32xf32>
    %463 = arith.negf %462 : vector<2x32xf32>
    %464 = math.exp %463 : vector<2x32xf32>
    %cst_147 = arith.constant 1.000000e+00 : f32
    %465 = vector.broadcast %cst_147 : f32 to vector<2x32xf32>
    %466 = arith.addf %465, %464 : vector<2x32xf32>
    %467 = arith.divf %465, %466 : vector<2x32xf32>
    %468 = vector.extract_strided_slice %457 {offsets = [0, 32], sizes = [2, 32], strides = [1, 1]} : vector<2x128xf32> to vector<2x32xf32>
    %469 = arith.negf %468 : vector<2x32xf32>
    %470 = math.exp %469 : vector<2x32xf32>
    %cst_148 = arith.constant 1.000000e+00 : f32
    %471 = vector.broadcast %cst_148 : f32 to vector<2x32xf32>
    %472 = arith.addf %471, %470 : vector<2x32xf32>
    %473 = arith.divf %471, %472 : vector<2x32xf32>
    %474 = vector.extract_strided_slice %457 {offsets = [0, 64], sizes = [2, 32], strides = [1, 1]} : vector<2x128xf32> to vector<2x32xf32>
    %475 = math.tanh %474 : vector<2x32xf32>
    %476 = vector.extract_strided_slice %457 {offsets = [0, 96], sizes = [2, 32], strides = [1, 1]} : vector<2x128xf32> to vector<2x32xf32>
    %477 = arith.negf %476 : vector<2x32xf32>
    %478 = math.exp %477 : vector<2x32xf32>
    %cst_149 = arith.constant 1.000000e+00 : f32
    %479 = vector.broadcast %cst_149 : f32 to vector<2x32xf32>
    %480 = arith.addf %479, %478 : vector<2x32xf32>
    %481 = arith.divf %479, %480 : vector<2x32xf32>
    %482 = arith.mulf %473, %420 : vector<2x32xf32>
    %483 = arith.mulf %467, %475 : vector<2x32xf32>
    %484 = arith.addf %482, %483 : vector<2x32xf32>
    %485 = math.tanh %484 : vector<2x32xf32>
    %486 = arith.mulf %481, %485 : vector<2x32xf32>
    %487 = vector.extract_strided_slice %461 {offsets = [0, 0], sizes = [2, 32], strides = [1, 1]} : vector<2x128xf32> to vector<2x32xf32>
    %488 = arith.negf %487 : vector<2x32xf32>
    %489 = math.exp %488 : vector<2x32xf32>
    %cst_150 = arith.constant 1.000000e+00 : f32
    %490 = vector.broadcast %cst_150 : f32 to vector<2x32xf32>
    %491 = arith.addf %490, %489 : vector<2x32xf32>
    %492 = arith.divf %490, %491 : vector<2x32xf32>
    %493 = vector.extract_strided_slice %461 {offsets = [0, 32], sizes = [2, 32], strides = [1, 1]} : vector<2x128xf32> to vector<2x32xf32>
    %494 = arith.negf %493 : vector<2x32xf32>
    %495 = math.exp %494 : vector<2x32xf32>
    %cst_151 = arith.constant 1.000000e+00 : f32
    %496 = vector.broadcast %cst_151 : f32 to vector<2x32xf32>
    %497 = arith.addf %496, %495 : vector<2x32xf32>
    %498 = arith.divf %496, %497 : vector<2x32xf32>
    %499 = vector.extract_strided_slice %461 {offsets = [0, 64], sizes = [2, 32], strides = [1, 1]} : vector<2x128xf32> to vector<2x32xf32>
    %500 = math.tanh %499 : vector<2x32xf32>
    %501 = vector.extract_strided_slice %461 {offsets = [0, 96], sizes = [2, 32], strides = [1, 1]} : vector<2x128xf32> to vector<2x32xf32>
    %502 = arith.negf %501 : vector<2x32xf32>
    %503 = math.exp %502 : vector<2x32xf32>
    %cst_152 = arith.constant 1.000000e+00 : f32
    %504 = vector.broadcast %cst_152 : f32 to vector<2x32xf32>
    %505 = arith.addf %504, %503 : vector<2x32xf32>
    %506 = arith.divf %504, %505 : vector<2x32xf32>
    %507 = arith.mulf %498, %445 : vector<2x32xf32>
    %508 = arith.mulf %492, %500 : vector<2x32xf32>
    %509 = arith.addf %507, %508 : vector<2x32xf32>
    %510 = math.tanh %509 : vector<2x32xf32>
    %511 = arith.mulf %506, %510 : vector<2x32xf32>
    %c7_153 = arith.constant 7 : index
    %c0_154 = arith.constant 0 : index
    %c0_155 = arith.constant 0 : index
    %512 = vector.load %arg4[%c7_153, %c0_154, %c0_155] : memref<8x2x32xf32, #tpu.memory_space<vmem>>, vector<1x2x32xf32>
    %513 = vector.shape_cast %512 : vector<1x2x32xf32> to vector<2x32xf32>
    %514 = vector.shape_cast %486 : vector<2x32xf32> to vector<1x2x32xf32>
    tpu.vector_store %arg4[%c7_153, %c0_154, %c0_155], %514 {strides = array<i32>} : memref<8x2x32xf32, #tpu.memory_space<vmem>>, vector<1x2x32xf32>,
    %c0_156 = arith.constant 0 : index
    %c0_157 = arith.constant 0 : index
    %c0_158 = arith.constant 0 : index
    %515 = vector.load %arg5[%c0_156, %c0_157, %c0_158] : memref<8x2x32xf32, #tpu.memory_space<vmem>>, vector<1x2x32xf32>
    %516 = vector.shape_cast %515 : vector<1x2x32xf32> to vector<2x32xf32>
    %517 = vector.shape_cast %511 : vector<2x32xf32> to vector<1x2x32xf32>
    tpu.vector_store %arg5[%c0_156, %c0_157, %c0_158], %517 {strides = array<i32>} : memref<8x2x32xf32, #tpu.memory_space<vmem>>, vector<1x2x32xf32>,
    %c0_159 = arith.constant 0 : index
    %c0_160 = arith.constant 0 : index
    %518 = vector.load %arg6[%c0_159, %c0_160] : memref<2x32xf32, #tpu.memory_space<vmem>>, vector<2x32xf32>
    tpu.vector_store %arg6[%c0_159, %c0_160], %484 {strides = array<i32>} : memref<2x32xf32, #tpu.memory_space<vmem>>, vector<2x32xf32>,
    %c0_161 = arith.constant 0 : index
    %c0_162 = arith.constant 0 : index
    %519 = vector.load %arg7[%c0_161, %c0_162] : memref<2x32xf32, #tpu.memory_space<vmem>>, vector<2x32xf32>
    tpu.vector_store %arg7[%c0_161, %c0_162], %509 {strides = array<i32>} : memref<2x32xf32, #tpu.memory_space<vmem>>, vector<2x32xf32>,
    return
  }
}

</mosaic_0001>

<bundles_post_ra>
// kernel: encoder_forward.2
= control target key start
LH: loop header
LB: loop body
LE: loop exit
PB: predicated region body
PF: predicated region fallthrough
CT: control target
= control target key end

     0   :  { %v2276_v0 = vmov 0.0|0.0   ;;  %vm2277_vm0 = vmmov 0   ;;  %v2278_v8 = vmov 0.0   ;;  %s2279_s19 = smov 64   ;;  %s2280_s20 = smov 32   ;;  %vm230_vm1 = vcmask 254976   ;;  %s2690_s2 = inlined_call_operand.vmem [shape: f32[32,128], index: 2, kind: input, shape index: {}]   ;;  %s2691_s3 = inlined_call_operand.vmem [shape: f32[32,128], index: 3, kind: input, shape index: {}]   ;;  %s2692_s0 = inlined_call_operand.vmem [shape: f32[8,2,128], index: 0, kind: input, shape index: {}]   ;;  %s2693_s1 = inlined_call_operand.vmem [shape: f32[8,2,128], index: 1, kind: input, shape index: {}]   ;;  %s2694_s4 = inlined_call_operand.vmem [shape: f32[8,2,32], index: 4, kind: output, shape index: {0}]   ;;  %s2695_s5 = inlined_call_operand.vmem [shape: f32[8,2,32], index: 5, kind: output, shape index: {1}]   ;;  %s2696_s6 = inlined_call_operand.vmem [shape: f32[2,32], index: 6, kind: output, shape index: {2}]   ;;  %s2697_s7 = inlined_call_operand.vmem [shape: f32[2,32], index: 7, kind: output, shape index: {3}]  }
   0x1   :  { %2046 = vmatprep.subr.bf16.mxu0 %v2276_v0  ;;  %v21_v1 = vld [vmem:[%s2690_s2] sm:$0xff]  ;;  %v22_v2 = vld [vmem:[%s2690_s2 + $0x8] sm:$0xff]  ;;  %2052 = vmatprep.subr.bf16.mxu1 %v2276_v0  ;;  %v23_v6 = vld [vmem:[%s2690_s2 + $0x10] sm:$0xff]  ;;  %vm30_vm2 = vcmask 261120  }
   0x2   :  { %v25_v3 = vld [vmem:[%s2691_s3] sm:$0xff]  ;;  %v2333_v4 = vpack.c.bf16 %v22_v2, %v21_v1  ;;  %v26_v5 = vld [vmem:[%s2691_s3 + $0x8] sm:$0xff]  ;;  %v24_v7 = vld [vmem:[%s2690_s2 + $0x18] sm:$0xff]  ;;  %1878 = vmatprep.mubr.msk.f32.mxu0 %vm2277_vm0, %v2278_v8  ;;  %1889 = vmatprep.mubr.msk.f32.mxu1 %vm2277_vm0, %v2278_v8 }
   0x3   :  { %v2348_v9 = vpack.c.bf16 %v26_v5, %v25_v3  ;;  %v27_v10 = vld [vmem:[%s2691_s3 + $0x10] sm:$0xff]  ;;  %v28_v11 = vld [vmem:[%s2691_s3 + $0x18] sm:$0xff]  ;;  %v2357_v12 = vpack.c.bf16 %v24_v7, %v23_v6  ;;  %v29_v14 = vld [vmem:[%s2692_s0] sm:$0x3] }
   0x4   :  { %2048 = vmatpush3.bf16.msra.mxu0 %v2333_v4  ;;  %v2361_v13 = vpack.c.bf16 %v28_v11, %v27_v10  ;;  %v1732_v15 = vld [vmem:[%s2693_s1 + $0xe] sm:$0x3]  ;;  %v1736_v50 = vld [vmem:[%s2692_s0 + $0x2] sm:$0x3]  ;;  %v1738_v54 = vld [vmem:[%s2693_s1 + $0xc] sm:$0x3] }
   0x5   :  { %2049 = vmatprep.subr.bf16.mxu0 %v2276_v0  ;;  %2054 = vmatpush3.bf16.msra.mxu1 %v2348_v9 }
   0x6   :  { %2055 = vmatprep.subr.bf16.mxu1 %v2276_v0 }
   0x8   :  { %2051 = vmatpush3.bf16.msra.mxu0 %v2357_v12 }
   0x9   :  { %2057 = vmatpush3.bf16.msra.mxu1 %v2361_v13  ;;  %2058 = vmatprep.subr.bf16.mxu0 %v2276_v0 }
   0xa   :  { %2064 = vmatprep.subr.bf16.mxu1 %v2276_v0 }
   0xb   :  { %1879 = vmatmul.mubr.f32.vlgmr.msra.gmra.mrb[0].mxu0 %v2278_v8 }
   0xc   :  { %1890 = vmatmul.mubr.f32.vlgmr.msra.gmra.mrb[0].mxu1 %v2278_v8  ;;  %2060 = vmatpush3.bf16.msra.mxu0 %v2333_v4 }
   0xd   :  { %2061 = vmatprep.subr.bf16.mxu0 %v2276_v0  ;;  %2066 = vmatpush3.bf16.msra.mxu1 %v2348_v9 }
   0xe   :  { %1900 = vmatprep.mubr.msk.f32.mxu0 %vm2277_vm0, %v2278_v8  ;;  %2067 = vmatprep.subr.bf16.mxu1 %v2276_v0 }
   0xf   :  { %1911 = vmatprep.mubr.msk.f32.mxu1 %vm2277_vm0, %v2278_v8 }
  0x10   :  { %2063 = vmatpush3.bf16.msra.mxu0 %v2357_v12 }
  0x11   :  { %2069 = vmatpush3.bf16.msra.mxu1 %v2361_v13  ;;  %2070 = vmatprep.subr.bf16.mxu0 %v2276_v0 }
  0x12   :  { %2076 = vmatprep.subr.bf16.mxu1 %v2276_v0 }
  0xde   :  { %v100_v16 = vpop.f32.mrb[0].mxu0 }
  0xdf   :  { %v104_v17 = vadd.f32 %v100_v16, %v29_v14  ;;  %v1880_v18 = vpop.f32.mrb[1].mxu0  ;;  %v173_v19 = vpop.f32.mrb[0].mxu1 }
  0xe0   :  { %v177_v20 = vadd.f32 %v1732_v15, %v173_v19  ;;  %v1891_v21 = vpop.f32.mrb[1].mxu1 }
  0xe1   :  { %2148 = vtanh.f32 %v104_v17  ;;  %v1733_v24 = vmul.f32 -1.442695, %v104_v17 }
  0xe2   :  { %2150 = vtanh.f32 %v177_v20  ;;  %v1734_v25 = vmul.f32 -1.442695, %v177_v20 }
  0xe3   :  { %2152 = vpow2.f32 %v1733_v24 }
  0xe4   :  { %2154 = vpow2.f32 %v1734_v25 }
  0xeb   :  { %v2149_v22 = vpop.eup %2148 }
  0xec   :  { %187 = vrot.lane.b32.xlu0 %v2149_v22, %s2279_s19  ;;  %v2151_v23 = vpop.eup %2150 }
  0xed   :  { %v2153_v26 = vpop.eup %2152 }
  0xee   :  { %v181_v27 = vadd.f32 1.0, %v2153_v26  ;;  %v2155_v28 = vpop.eup %2154 }
  0xef   :  { %v205_v29 = vadd.f32 1.0, %v2155_v28  ;;  %v1744_v28 = vld [vmem:[%s2692_s0 + $0x4] sm:$0x3] }
  0xf0   :  { %211 = vrot.lane.b32.xlu0 %v2151_v23, %s2279_s19  ;;  %2156 = vrcp.f32 %v181_v27 }
  0xf1   :  { %2158 = vrcp.f32 %v205_v29 }
  0xfa   :  { %v2157_v30 = vpop.eup %2156 }
  0xfb   :  { %v2159_v33 = vpop.eup %2158  ;;  %v185_v36 = vmul.f32 0.0, %v2157_v30 }
  0xfc   :  { %v209_v39 = vmul.f32 0.0, %v2159_v33 }
 0x15e   :  { %v188_v31 = vpop.permute.xlu0 %187 }
 0x15f   :  { %v190_v32 = vmul.f32 %v2157_v30, %v188_v31 }
 0x161   :  { %192 = vrot.lane.b32.xlu1 %v190_v32, %s2280_s20  ;;  %v1746_v32 = vld [vmem:[%s2693_s1 + $0xa] sm:$0x3] }
 0x162   :  { %v212_v34 = vpop.permute.xlu0 %211 }
 0x163   :  { %v214_v35 = vmul.f32 %v2159_v33, %v212_v34 }
 0x165   :  { %216 = vrot.lane.b32.xlu1 %v214_v35, %s2280_s20 }
 0x1d3   :  { %v193_v37 = vpop.permute.xlu1 %192 }
 0x1d4   :  { %v2392_v38 = vadd.f32 %v193_v37, %v185_v36 }
 0x1d6   :  { %2160 = vtanh.f32 %v2392_v38 }
 0x1d7   :  { %v217_v40 = vpop.permute.xlu1 %216 }
 0x1d8   :  { %v2395_v41 = vadd.f32 %v217_v40, %v209_v39 }
 0x1da   :  { %2162 = vtanh.f32 %v2395_v41 }
 0x1e0   :  { %v2161_v42 = vpop.eup %2160 }
 0x1e1   :  { %198 = vrot.lane.b32.xlu0 %v2161_v42, %s2279_s19 }
 0x1e4   :  { %v2163_v43 = vpop.eup %2162 }
 0x1e5   :  { %222 = vrot.lane.b32.xlu1 %v2163_v43, %s2279_s19 }
 0x253   :  { %v199_v44 = vpop.permute.xlu0 %198 }
 0x254   :  { %v201_v45 = vmul.f32 %v2157_v30, %v199_v44 }
 0x256   :  { %227 = vrot.lane.b32.xlu0 %v201_v45, %s2280_s20 }
 0x257   :  { %v223_v46 = vpop.permute.xlu1 %222 }
 0x258   :  { %v225_v47 = vmul.f32 %v2159_v33, %v223_v46 }
 0x25a   :  { %233 = vrot.lane.b32.xlu1 %v225_v47, %s2280_s20 }
 0x2c8   :  { %v228_v48 = vpop.permute.xlu0 %227 }
 0x2c9   :  { %231 = vst.msk [vmem:[%s2694_s4] sm:$0x3] %vm230_vm1, %v228_v48  ;;  %1901 = vmatmul.mubr.msk.f32.vlgmr.msra.gmra.mrb[2].mxu0 %vm30_vm2, %v228_v48 }
 0x2ca   :  { %2072 = vmatpush3.bf16.msra.mxu0 %v2333_v4  ;;  %1922 = vmatprep.mubr.msk.f32.mxu0 %vm2277_vm0, %v2278_v8 }
 0x2cb   :  { %2073 = vmatprep.subr.bf16.mxu0 %v2276_v0 }
 0x2cc   :  { %v234_v49 = vpop.permute.xlu1 %233 }
 0x2cd   :  { %1735 = vst.msk [vmem:[%s2695_s5 + $0xe] sm:$0x3] %vm230_vm1, %v234_v49  ;;  %1912 = vmatmul.mubr.msk.f32.vlgmr.msra.gmra.mrb[2].mxu1 %vm30_vm2, %v234_v49 }
 0x2ce   :  { %2075 = vmatpush3.bf16.msra.mxu0 %v2357_v12  ;;  %2078 = vmatpush3.bf16.msra.mxu1 %v2348_v9 }
 0x2cf   :  { %2079 = vmatprep.subr.bf16.mxu1 %v2276_v0  ;;  %1933 = vmatprep.mubr.msk.f32.mxu1 %vm2277_vm0, %v2278_v8 }
 0x2d0   :  { %2082 = vmatprep.subr.bf16.mxu0 %v2276_v0 }
 0x2d2   :  { %2081 = vmatpush3.bf16.msra.mxu1 %v2361_v13 }
 0x2d3   :  { %2088 = vmatprep.subr.bf16.mxu1 %v2276_v0 }
 0x39c   :  { %v308_v51 = vpop.f32.mrb[2].mxu0 }
 0x39d   :  { %v312_v52 = vadd.f32 %v1736_v50, %v308_v51  ;;  %v1902_v53 = vpop.f32.mrb[3].mxu0 }
 0x39f   :  { %2164 = vtanh.f32 %v312_v52  ;;  %v1740_v60 = vmul.f32 -1.442695, %v312_v52 }
 0x3a0   :  { %v383_v55 = vpop.f32.mrb[2].mxu1 }
 0x3a1   :  { %v387_v56 = vadd.f32 %v1738_v54, %v383_v55  ;;  %v1913_v57 = vpop.f32.mrb[3].mxu1 }
 0x3a3   :  { %2166 = vtanh.f32 %v387_v56  ;;  %v1741_v61 = vmul.f32 -1.442695, %v387_v56 }
 0x3a4   :  { %2168 = vpow2.f32 %v1740_v60 }
 0x3a5   :  { %2170 = vpow2.f32 %v1741_v61 }
 0x3a9   :  { %v2165_v58 = vpop.eup %2164 }
 0x3aa   :  { %397 = vrot.lane.b32.xlu0 %v2165_v58, %s2279_s19 }
 0x3ad   :  { %v2167_v59 = vpop.eup %2166 }
 0x3ae   :  { %421 = vrot.lane.b32.xlu1 %v2167_v59, %s2279_s19  ;;  %v2169_v62 = vpop.eup %2168 }
 0x3af   :  { %v391_v63 = vadd.f32 1.0, %v2169_v62  ;;  %v2171_v1 = vpop.eup %2170 }
 0x3b0   :  { %v415_v2 = vadd.f32 1.0, %v2171_v1  ;;  %v1752_v1 = vld [vmem:[%s2692_s0 + $0x6] sm:$0x3] }
 0x3b1   :  { %2172 = vrcp.f32 %v391_v63 }
 0x3b2   :  { %2174 = vrcp.f32 %v415_v2 }
 0x3bb   :  { %v2173_v3 = vpop.eup %2172 }
 0x3bc   :  { %v2175_v7 = vpop.eup %2174  ;;  %v395_v14 = vmul.f32 %v2173_v3, %v2392_v38 }
 0x3bd   :  { %v419_v17 = vmul.f32 %v2175_v7, %v2395_v41 }
 0x41c   :  { %v398_v5 = vpop.permute.xlu0 %397 }
 0x41d   :  { %v400_v6 = vmul.f32 %v2173_v3, %v398_v5 }
 0x41f   :  { %402 = vrot.lane.b32.xlu0 %v400_v6, %s2280_s20  ;;  %v1754_v6 = vld [vmem:[%s2693_s1 + $0x8] sm:$0x3] }
 0x420   :  { %v422_v10 = vpop.permute.xlu1 %421 }
 0x421   :  { %v424_v11 = vmul.f32 %v2175_v7, %v422_v10 }
 0x423   :  { %426 = vrot.lane.b32.xlu1 %v424_v11, %s2280_s20 }
 0x491   :  { %v403_v15 = vpop.permute.xlu0 %402 }
 0x492   :  { %v2435_v16 = vadd.f32 %v403_v15, %v395_v14 }
 0x494   :  { %2176 = vtanh.f32 %v2435_v16 }
 0x495   :  { %v427_v18 = vpop.permute.xlu1 %426 }
 0x496   :  { %v2439_v19 = vadd.f32 %v427_v18, %v419_v17 }
 0x498   :  { %2178 = vtanh.f32 %v2439_v19 }
 0x49e   :  { %v2177_v20 = vpop.eup %2176 }
 0x49f   :  { %408 = vrot.lane.b32.xlu0 %v2177_v20, %s2279_s19 }
 0x4a2   :  { %v2179_v21 = vpop.eup %2178 }
 0x4a3   :  { %432 = vrot.lane.b32.xlu1 %v2179_v21, %s2279_s19 }
 0x511   :  { %v409_v22 = vpop.permute.xlu0 %408 }
 0x512   :  { %v411_v23 = vmul.f32 %v2173_v3, %v409_v22 }
 0x514   :  { %437 = vrot.lane.b32.xlu0 %v411_v23, %s2280_s20 }
 0x515   :  { %v433_v24 = vpop.permute.xlu1 %432 }
 0x516   :  { %v435_v25 = vmul.f32 %v2175_v7, %v433_v24 }
 0x518   :  { %443 = vrot.lane.b32.xlu1 %v435_v25, %s2280_s20 }
 0x586   :  { %v438_v26 = vpop.permute.xlu0 %437 }
 0x587   :  { %1742 = vst.msk [vmem:[%s2694_s4 + $0x2] sm:$0x3] %vm230_vm1, %v438_v26  ;;  %1923 = vmatmul.mubr.msk.f32.vlgmr.msra.gmra.mrb[4].mxu0 %vm30_vm2, %v438_v26 }
 0x588   :  { %2084 = vmatpush3.bf16.msra.mxu0 %v2333_v4  ;;  %1944 = vmatprep.mubr.msk.f32.mxu0 %vm2277_vm0, %v2278_v8 }
 0x589   :  { %2085 = vmatprep.subr.bf16.mxu0 %v2276_v0 }
 0x58a   :  { %v444_v27 = vpop.permute.xlu1 %443 }
 0x58b   :  { %1743 = vst.msk [vmem:[%s2695_s5 + $0xc] sm:$0x3] %vm230_vm1, %v444_v27  ;;  %1934 = vmatmul.mubr.msk.f32.vlgmr.msra.gmra.mrb[4].mxu1 %vm30_vm2, %v444_v27 }
 0x58c   :  { %2087 = vmatpush3.bf16.msra.mxu0 %v2357_v12  ;;  %2090 = vmatpush3.bf16.msra.mxu1 %v2348_v9 }
 0x58d   :  { %2091 = vmatprep.subr.bf16.mxu1 %v2276_v0  ;;  %1955 = vmatprep.mubr.msk.f32.mxu1 %vm2277_vm0, %v2278_v8 }
 0x58e   :  { %2094 = vmatprep.subr.bf16.mxu0 %v2276_v0 }
 0x590   :  { %2093 = vmatpush3.bf16.msra.mxu1 %v2361_v13 }
 0x591   :  { %2100 = vmatprep.subr.bf16.mxu1 %v2276_v0 }
 0x65a   :  { %v518_v29 = vpop.f32.mrb[4].mxu0 }
 0x65b   :  { %v522_v30 = vadd.f32 %v1744_v28, %v518_v29  ;;  %v1924_v31 = vpop.f32.mrb[5].mxu0 }
 0x65d   :  { %2180 = vtanh.f32 %v522_v30  ;;  %v1748_v38 = vmul.f32 -1.442695, %v522_v30 }
 0x65e   :  { %v593_v33 = vpop.f32.mrb[4].mxu1 }
 0x65f   :  { %v597_v34 = vadd.f32 %v1746_v32, %v593_v33  ;;  %v1935_v35 = vpop.f32.mrb[5].mxu1 }
 0x661   :  { %2182 = vtanh.f32 %v597_v34  ;;  %v1749_v39 = vmul.f32 -1.442695, %v597_v34 }
 0x662   :  { %2184 = vpow2.f32 %v1748_v38 }
 0x663   :  { %2186 = vpow2.f32 %v1749_v39 }
 0x667   :  { %v2181_v36 = vpop.eup %2180 }
 0x668   :  { %607 = vrot.lane.b32.xlu0 %v2181_v36, %s2279_s19 }
 0x66b   :  { %v2183_v37 = vpop.eup %2182 }
 0x66c   :  { %631 = vrot.lane.b32.xlu1 %v2183_v37, %s2279_s19  ;;  %v2185_v40 = vpop.eup %2184 }
 0x66d   :  { %v601_v41 = vadd.f32 1.0, %v2185_v40  ;;  %v2187_v42 = vpop.eup %2186 }
 0x66e   :  { %v625_v43 = vadd.f32 1.0, %v2187_v42  ;;  %v1760_v42 = vld [vmem:[%s2692_s0 + $0x8] sm:$0x3] }
 0x66f   :  { %2188 = vrcp.f32 %v601_v41 }
 0x670   :  { %2190 = vrcp.f32 %v625_v43 }
 0x679   :  { %v2189_v44 = vpop.eup %2188 }
 0x67a   :  { %v2191_v47 = vpop.eup %2190  ;;  %v605_v50 = vmul.f32 %v2189_v44, %v2435_v16 }
 0x67b   :  { %v629_v53 = vmul.f32 %v2191_v47, %v2439_v19 }
 0x6da   :  { %v608_v45 = vpop.permute.xlu0 %607 }
 0x6db   :  { %v610_v46 = vmul.f32 %v2189_v44, %v608_v45 }
 0x6dd   :  { %612 = vrot.lane.b32.xlu0 %v610_v46, %s2280_s20  ;;  %v1762_v46 = vld [vmem:[%s2693_s1 + $0x6] sm:$0x3] }
 0x6de   :  { %v632_v48 = vpop.permute.xlu1 %631 }
 0x6df   :  { %v634_v49 = vmul.f32 %v2191_v47, %v632_v48 }
 0x6e1   :  { %636 = vrot.lane.b32.xlu1 %v634_v49, %s2280_s20 }
 0x74f   :  { %v613_v51 = vpop.permute.xlu0 %612 }
 0x750   :  { %v2479_v52 = vadd.f32 %v613_v51, %v605_v50 }
 0x752   :  { %2192 = vtanh.f32 %v2479_v52 }
 0x753   :  { %v637_v54 = vpop.permute.xlu1 %636 }
 0x754   :  { %v2483_v55 = vadd.f32 %v637_v54, %v629_v53 }
 0x756   :  { %2194 = vtanh.f32 %v2483_v55 }
 0x75c   :  { %v2193_v56 = vpop.eup %2192 }
 0x75d   :  { %618 = vrot.lane.b32.xlu0 %v2193_v56, %s2279_s19 }
 0x760   :  { %v2195_v57 = vpop.eup %2194 }
 0x761   :  { %642 = vrot.lane.b32.xlu1 %v2195_v57, %s2279_s19 }
 0x7cf   :  { %v619_v58 = vpop.permute.xlu0 %618 }
 0x7d0   :  { %v621_v59 = vmul.f32 %v2189_v44, %v619_v58 }
 0x7d2   :  { %647 = vrot.lane.b32.xlu0 %v621_v59, %s2280_s20 }
 0x7d3   :  { %v643_v60 = vpop.permute.xlu1 %642 }
 0x7d4   :  { %v645_v61 = vmul.f32 %v2191_v47, %v643_v60 }
 0x7d6   :  { %653 = vrot.lane.b32.xlu1 %v645_v61, %s2280_s20 }
 0x844   :  { %v648_v62 = vpop.permute.xlu0 %647 }
 0x845   :  { %1750 = vst.msk [vmem:[%s2694_s4 + $0x4] sm:$0x3] %vm230_vm1, %v648_v62  ;;  %1945 = vmatmul.mubr.msk.f32.vlgmr.msra.gmra.mrb[6].mxu0 %vm30_vm2, %v648_v62 }
 0x846   :  { %2096 = vmatpush3.bf16.msra.mxu0 %v2333_v4  ;;  %1966 = vmatprep.mubr.msk.f32.mxu0 %vm2277_vm0, %v2278_v8 }
 0x847   :  { %2097 = vmatprep.subr.bf16.mxu0 %v2276_v0 }
 0x848   :  { %v654_v63 = vpop.permute.xlu1 %653 }
 0x849   :  { %1751 = vst.msk [vmem:[%s2695_s5 + $0xa] sm:$0x3] %vm230_vm1, %v654_v63  ;;  %1956 = vmatmul.mubr.msk.f32.vlgmr.msra.gmra.mrb[6].mxu1 %vm30_vm2, %v654_v63 }
 0x84a   :  { %2099 = vmatpush3.bf16.msra.mxu0 %v2357_v12  ;;  %2102 = vmatpush3.bf16.msra.mxu1 %v2348_v9 }
 0x84b   :  { %2103 = vmatprep.subr.bf16.mxu1 %v2276_v0  ;;  %1977 = vmatprep.mubr.msk.f32.mxu1 %vm2277_vm0, %v2278_v8 }
 0x84c   :  { %2106 = vmatprep.subr.bf16.mxu0 %v2276_v0 }
 0x84e   :  { %2105 = vmatpush3.bf16.msra.mxu1 %v2361_v13 }
 0x84f   :  { %2112 = vmatprep.subr.bf16.mxu1 %v2276_v0 }
 0x918   :  { %v728_v2 = vpop.f32.mrb[6].mxu0 }
 0x919   :  { %v732_v3 = vadd.f32 %v1752_v1, %v728_v2  ;;  %v1946_v5 = vpop.f32.mrb[7].mxu0 }
 0x91b   :  { %2196 = vtanh.f32 %v732_v3  ;;  %v1756_v16 = vmul.f32 -1.442695, %v732_v3 }
 0x91c   :  { %v803_v7 = vpop.f32.mrb[6].mxu1 }
 0x91d   :  { %v807_v10 = vadd.f32 %v1754_v6, %v803_v7  ;;  %v1957_v11 = vpop.f32.mrb[7].mxu1 }
 0x91f   :  { %2198 = vtanh.f32 %v807_v10  ;;  %v1757_v17 = vmul.f32 -1.442695, %v807_v10 }
 0x920   :  { %2200 = vpow2.f32 %v1756_v16 }
 0x921   :  { %2202 = vpow2.f32 %v1757_v17 }
 0x925   :  { %v2197_v14 = vpop.eup %2196 }
 0x926   :  { %817 = vrot.lane.b32.xlu0 %v2197_v14, %s2279_s19 }
 0x929   :  { %v2199_v15 = vpop.eup %2198 }
 0x92a   :  { %841 = vrot.lane.b32.xlu1 %v2199_v15, %s2279_s19  ;;  %v2201_v18 = vpop.eup %2200 }
 0x92b   :  { %v811_v19 = vadd.f32 1.0, %v2201_v18  ;;  %v2203_v20 = vpop.eup %2202 }
 0x92c   :  { %v835_v21 = vadd.f32 1.0, %v2203_v20  ;;  %v1768_v20 = vld [vmem:[%s2692_s0 + $0xa] sm:$0x3] }
 0x92d   :  { %2204 = vrcp.f32 %v811_v19 }
 0x92e   :  { %2206 = vrcp.f32 %v835_v21 }
 0x937   :  { %v2205_v22 = vpop.eup %2204 }
 0x938   :  { %v2207_v25 = vpop.eup %2206  ;;  %v815_v28 = vmul.f32 %v2205_v22, %v2479_v52 }
 0x939   :  { %v839_v31 = vmul.f32 %v2207_v25, %v2483_v55 }
 0x998   :  { %v818_v23 = vpop.permute.xlu0 %817 }
 0x999   :  { %v820_v24 = vmul.f32 %v2205_v22, %v818_v23 }
 0x99b   :  { %822 = vrot.lane.b32.xlu0 %v820_v24, %s2280_s20  ;;  %v1770_v24 = vld [vmem:[%s2693_s1 + $0x4] sm:$0x3] }
 0x99c   :  { %v842_v26 = vpop.permute.xlu1 %841 }
 0x99d   :  { %v844_v27 = vmul.f32 %v2207_v25, %v842_v26 }
 0x99f   :  { %846 = vrot.lane.b32.xlu1 %v844_v27, %s2280_s20 }
 0xa0d   :  { %v823_v29 = vpop.permute.xlu0 %822 }
 0xa0e   :  { %v2523_v30 = vadd.f32 %v823_v29, %v815_v28 }
 0xa10   :  { %2208 = vtanh.f32 %v2523_v30 }
 0xa11   :  { %v847_v32 = vpop.permute.xlu1 %846 }
 0xa12   :  { %v2527_v33 = vadd.f32 %v847_v32, %v839_v31 }
 0xa14   :  { %2210 = vtanh.f32 %v2527_v33 }
 0xa1a   :  { %v2209_v34 = vpop.eup %2208 }
 0xa1b   :  { %828 = vrot.lane.b32.xlu0 %v2209_v34, %s2279_s19 }
 0xa1e   :  { %v2211_v35 = vpop.eup %2210 }
 0xa1f   :  { %852 = vrot.lane.b32.xlu1 %v2211_v35, %s2279_s19 }
 0xa8d   :  { %v829_v36 = vpop.permute.xlu0 %828 }
 0xa8e   :  { %v831_v37 = vmul.f32 %v2205_v22, %v829_v36 }
 0xa90   :  { %857 = vrot.lane.b32.xlu0 %v831_v37, %s2280_s20 }
 0xa91   :  { %v853_v38 = vpop.permute.xlu1 %852 }
 0xa92   :  { %v855_v39 = vmul.f32 %v2207_v25, %v853_v38 }
 0xa94   :  { %863 = vrot.lane.b32.xlu1 %v855_v39, %s2280_s20 }
 0xb02   :  { %v858_v40 = vpop.permute.xlu0 %857 }
 0xb03   :  { %1758 = vst.msk [vmem:[%s2694_s4 + $0x6] sm:$0x3] %vm230_vm1, %v858_v40  ;;  %1967 = vmatmul.mubr.msk.f32.vlgmr.msra.gmra.mrb[8].mxu0 %vm30_vm2, %v858_v40 }
 0xb04   :  { %2108 = vmatpush3.bf16.msra.mxu0 %v2333_v4  ;;  %1988 = vmatprep.mubr.msk.f32.mxu0 %vm2277_vm0, %v2278_v8 }
 0xb05   :  { %2109 = vmatprep.subr.bf16.mxu0 %v2276_v0 }
 0xb06   :  { %v864_v41 = vpop.permute.xlu1 %863 }
 0xb07   :  { %1759 = vst.msk [vmem:[%s2695_s5 + $0x8] sm:$0x3] %vm230_vm1, %v864_v41  ;;  %1978 = vmatmul.mubr.msk.f32.vlgmr.msra.gmra.mrb[8].mxu1 %vm30_vm2, %v864_v41 }
 0xb08   :  { %2111 = vmatpush3.bf16.msra.mxu0 %v2357_v12  ;;  %2114 = vmatpush3.bf16.msra.mxu1 %v2348_v9 }
 0xb09   :  { %2115 = vmatprep.subr.bf16.mxu1 %v2276_v0  ;;  %1999 = vmatprep.mubr.msk.f32.mxu1 %vm2277_vm0, %v2278_v8 }
 0xb0a   :  { %2118 = vmatprep.subr.bf16.mxu0 %v2276_v0 }
 0xb0c   :  { %2117 = vmatpush3.bf16.msra.mxu1 %v2361_v13 }
 0xb0d   :  { %2124 = vmatprep.subr.bf16.mxu1 %v2276_v0 }
 0xbd6   :  { %v938_v43 = vpop.f32.mrb[8].mxu0 }
 0xbd7   :  { %v942_v44 = vadd.f32 %v1760_v42, %v938_v43  ;;  %v1968_v45 = vpop.f32.mrb[9].mxu0 }
 0xbd9   :  { %2212 = vtanh.f32 %v942_v44  ;;  %v1764_v52 = vmul.f32 -1.442695, %v942_v44 }
 0xbda   :  { %v1013_v47 = vpop.f32.mrb[8].mxu1 }
 0xbdb   :  { %v1017_v48 = vadd.f32 %v1762_v46, %v1013_v47  ;;  %v1979_v49 = vpop.f32.mrb[9].mxu1 }
 0xbdd   :  { %2214 = vtanh.f32 %v1017_v48  ;;  %v1765_v53 = vmul.f32 -1.442695, %v1017_v48 }
 0xbde   :  { %2216 = vpow2.f32 %v1764_v52 }
 0xbdf   :  { %2218 = vpow2.f32 %v1765_v53 }
 0xbe3   :  { %v2213_v50 = vpop.eup %2212 }
 0xbe4   :  { %1027 = vrot.lane.b32.xlu0 %v2213_v50, %s2279_s19 }
 0xbe7   :  { %v2215_v51 = vpop.eup %2214 }
 0xbe8   :  { %1051 = vrot.lane.b32.xlu1 %v2215_v51, %s2279_s19  ;;  %v2217_v54 = vpop.eup %2216 }
 0xbe9   :  { %v1021_v55 = vadd.f32 1.0, %v2217_v54  ;;  %v2219_v56 = vpop.eup %2218 }
 0xbea   :  { %v1045_v57 = vadd.f32 1.0, %v2219_v56 }
 0xbeb   :  { %2220 = vrcp.f32 %v1021_v55 }
 0xbec   :  { %2222 = vrcp.f32 %v1045_v57 }
 0xbf5   :  { %v2221_v58 = vpop.eup %2220 }
 0xbf6   :  { %v2223_v61 = vpop.eup %2222  ;;  %v1025_v1 = vmul.f32 %v2221_v58, %v2523_v30 }
 0xbf7   :  { %v1049_v5 = vmul.f32 %v2223_v61, %v2527_v33 }
 0xc56   :  { %v1028_v59 = vpop.permute.xlu0 %1027 }
 0xc57   :  { %v1030_v60 = vmul.f32 %v2221_v58, %v1028_v59 }
 0xc59   :  { %1032 = vrot.lane.b32.xlu0 %v1030_v60, %s2280_s20 }
 0xc5a   :  { %v1052_v62 = vpop.permute.xlu1 %1051 }
 0xc5b   :  { %v1054_v63 = vmul.f32 %v2223_v61, %v1052_v62 }
 0xc5d   :  { %1056 = vrot.lane.b32.xlu1 %v1054_v63, %s2280_s20 }
 0xccb   :  { %v1033_v2 = vpop.permute.xlu0 %1032 }
 0xccc   :  { %v2567_v3 = vadd.f32 %v1033_v2, %v1025_v1 }
 0xcce   :  { %2224 = vtanh.f32 %v2567_v3 }
 0xccf   :  { %v1057_v6 = vpop.permute.xlu1 %1056 }
 0xcd0   :  { %v2571_v7 = vadd.f32 %v1057_v6, %v1049_v5 }
 0xcd2   :  { %2226 = vtanh.f32 %v2571_v7 }
 0xcd8   :  { %v2225_v10 = vpop.eup %2224 }
 0xcd9   :  { %1038 = vrot.lane.b32.xlu0 %v2225_v10, %s2279_s19 }
 0xcdc   :  { %v2227_v11 = vpop.eup %2226 }
 0xcdd   :  { %1062 = vrot.lane.b32.xlu1 %v2227_v11, %s2279_s19 }
 0xd4b   :  { %v1039_v14 = vpop.permute.xlu0 %1038 }
 0xd4c   :  { %v1041_v15 = vmul.f32 %v2221_v58, %v1039_v14 }
 0xd4e   :  { %1067 = vrot.lane.b32.xlu0 %v1041_v15, %s2280_s20 }
 0xd4f   :  { %v1063_v16 = vpop.permute.xlu1 %1062 }
 0xd50   :  { %v1065_v17 = vmul.f32 %v2223_v61, %v1063_v16 }
 0xd52   :  { %1073 = vrot.lane.b32.xlu1 %v1065_v17, %s2280_s20 }
 0xdc0   :  { %v1068_v18 = vpop.permute.xlu0 %1067 }
 0xdc1   :  { %1766 = vst.msk [vmem:[%s2694_s4 + $0x8] sm:$0x3] %vm230_vm1, %v1068_v18  ;;  %1989 = vmatmul.mubr.msk.f32.vlgmr.msra.gmra.mrb[10].mxu0 %vm30_vm2, %v1068_v18 }
 0xdc2   :  { %2120 = vmatpush3.bf16.msra.mxu0 %v2333_v4  ;;  %2010 = vmatprep.mubr.msk.f32.mxu0 %vm2277_vm0, %v2278_v8 }
 0xdc3   :  { %2121 = vmatprep.subr.bf16.mxu0 %v2276_v0 }
 0xdc4   :  { %v1074_v19 = vpop.permute.xlu1 %1073 }
 0xdc5   :  { %1767 = vst.msk [vmem:[%s2695_s5 + $0x6] sm:$0x3] %vm230_vm1, %v1074_v19  ;;  %2000 = vmatmul.mubr.msk.f32.vlgmr.msra.gmra.mrb[10].mxu1 %vm30_vm2, %v1074_v19 }
 0xdc6   :  { %2123 = vmatpush3.bf16.msra.mxu0 %v2357_v12  ;;  %2126 = vmatpush3.bf16.msra.mxu1 %v2348_v9 }
 0xdc7   :  { %2127 = vmatprep.subr.bf16.mxu1 %v2276_v0  ;;  %2021 = vmatprep.mubr.msk.f32.mxu1 %vm2277_vm0, %v2278_v8 }
 0xdc8   :  { %2130 = vmatprep.subr.bf16.mxu0 %v2276_v0 }
 0xdca   :  { %2129 = vmatpush3.bf16.msra.mxu1 %v2361_v13 }
 0xdcb   :  { %2136 = vmatprep.subr.bf16.mxu1 %v2276_v0 }
 0xe94   :  { %v1148_v21 = vpop.f32.mrb[10].mxu0 }
 0xe95   :  { %v1152_v22 = vadd.f32 %v1768_v20, %v1148_v21  ;;  %v1990_v23 = vpop.f32.mrb[11].mxu0 }
 0xe97   :  { %2228 = vtanh.f32 %v1152_v22  ;;  %v1772_v30 = vmul.f32 -1.442695, %v1152_v22 }
 0xe98   :  { %v1223_v25 = vpop.f32.mrb[10].mxu1 }
 0xe99   :  { %v1227_v26 = vadd.f32 %v1770_v24, %v1223_v25  ;;  %v2001_v27 = vpop.f32.mrb[11].mxu1 }
 0xe9b   :  { %2230 = vtanh.f32 %v1227_v26  ;;  %v1773_v31 = vmul.f32 -1.442695, %v1227_v26 }
 0xe9c   :  { %2232 = vpow2.f32 %v1772_v30 }
 0xe9d   :  { %2234 = vpow2.f32 %v1773_v31 }
 0xea1   :  { %v2229_v28 = vpop.eup %2228 }
 0xea2   :  { %1237 = vrot.lane.b32.xlu0 %v2229_v28, %s2279_s19  ;;  %v1784_v28 = vld [vmem:[%s2692_s0 + $0xe] sm:$0x3] }
 0xea5   :  { %v2231_v29 = vpop.eup %2230 }
 0xea6   :  { %1261 = vrot.lane.b32.xlu1 %v2231_v29, %s2279_s19  ;;  %v2233_v32 = vpop.eup %2232 }
 0xea7   :  { %v1231_v33 = vadd.f32 1.0, %v2233_v32  ;;  %v2235_v34 = vpop.eup %2234  ;;  %v1573_v32 = vld [vmem:[%s2693_s1] sm:$0x3] }
 0xea8   :  { %v1255_v35 = vadd.f32 1.0, %v2235_v34 }
 0xea9   :  { %2236 = vrcp.f32 %v1231_v33 }
 0xeaa   :  { %2238 = vrcp.f32 %v1255_v35 }
 0xeb3   :  { %v2237_v36 = vpop.eup %2236 }
 0xeb4   :  { %v2239_v39 = vpop.eup %2238  ;;  %v1235_v42 = vmul.f32 %v2237_v36, %v2567_v3 }
 0xeb5   :  { %v1259_v45 = vmul.f32 %v2239_v39, %v2571_v7 }
 0xf14   :  { %v1238_v37 = vpop.permute.xlu0 %1237 }
 0xf15   :  { %v1240_v38 = vmul.f32 %v2237_v36, %v1238_v37 }
 0xf17   :  { %1242 = vrot.lane.b32.xlu0 %v1240_v38, %s2280_s20 }
 0xf18   :  { %v1262_v40 = vpop.permute.xlu1 %1261 }
 0xf19   :  { %v1264_v41 = vmul.f32 %v2239_v39, %v1262_v40 }
 0xf1b   :  { %1266 = vrot.lane.b32.xlu1 %v1264_v41, %s2280_s20 }
 0xf89   :  { %v1243_v43 = vpop.permute.xlu0 %1242 }
 0xf8a   :  { %v1245_v44 = vadd.f32 %v1243_v43, %v1235_v42 }
 0xf8c   :  { %2240 = vtanh.f32 %v1245_v44 }
 0xf8d   :  { %v1267_v46 = vpop.permute.xlu1 %1266 }
 0xf8e   :  { %v1269_v47 = vadd.f32 %v1267_v46, %v1259_v45 }
 0xf90   :  { %2242 = vtanh.f32 %v1269_v47 }
 0xf96   :  { %v2241_v48 = vpop.eup %2240 }
 0xf97   :  { %1248 = vrot.lane.b32.xlu0 %v2241_v48, %s2279_s19 }
 0xf9a   :  { %v2243_v49 = vpop.eup %2242 }
 0xf9b   :  { %1272 = vrot.lane.b32.xlu1 %v2243_v49, %s2279_s19 }
0x1009   :  { %v1249_v50 = vpop.permute.xlu0 %1248 }
0x100a   :  { %v1251_v51 = vmul.f32 %v2237_v36, %v1249_v50 }
0x100c   :  { %1277 = vrot.lane.b32.xlu0 %v1251_v51, %s2280_s20 }
0x100d   :  { %v1273_v52 = vpop.permute.xlu1 %1272 }
0x100e   :  { %v1275_v53 = vmul.f32 %v2239_v39, %v1273_v52 }
0x1010   :  { %1283 = vrot.lane.b32.xlu1 %v1275_v53, %s2280_s20 }
0x107e   :  { %v1278_v54 = vpop.permute.xlu0 %1277 }
0x107f   :  { %1774 = vst.msk [vmem:[%s2694_s4 + $0xa] sm:$0x3] %vm230_vm1, %v1278_v54  ;;  %2011 = vmatmul.mubr.msk.f32.vlgmr.msra.gmra.mrb[12].mxu0 %vm30_vm2, %v1278_v54 }
0x1080   :  { %2132 = vmatpush3.bf16.msra.mxu0 %v2333_v4  ;;  %2032 = vmatprep.mubr.msk.f32.mxu0 %vm2277_vm0, %v2278_v8  ;;  %v1776_v4 = vld [vmem:[%s2692_s0 + $0xc] sm:$0x3]  ;;  %s2281_s0 = smov 96  }
0x1081   :  { %2133 = vmatprep.subr.bf16.mxu0 %v2276_v0 }
0x1082   :  { %v1284_v55 = vpop.permute.xlu1 %1283 }
0x1083   :  { %1775 = vst.msk [vmem:[%s2695_s5 + $0x4] sm:$0x3] %vm230_vm1, %v1284_v55  ;;  %2022 = vmatmul.mubr.msk.f32.vlgmr.msra.gmra.mrb[12].mxu1 %vm30_vm2, %v1284_v55 }
0x1084   :  { %2135 = vmatpush3.bf16.msra.mxu0 %v2357_v12  ;;  %2138 = vmatpush3.bf16.msra.mxu1 %v2348_v9  ;;  %v1778_v12 = vld [vmem:[%s2693_s1 + $0x2] sm:$0x3] }
0x1085   :  { %2139 = vmatprep.subr.bf16.mxu1 %v2276_v0  ;;  %2043 = vmatprep.mubr.msk.f32.mxu1 %vm2277_vm0, %v2278_v8 }
0x1088   :  { %2141 = vmatpush3.bf16.msra.mxu1 %v2361_v13 }
0x1152   :  { %v1358_v56 = vpop.f32.mrb[12].mxu0 }
0x1153   :  { %v1362_v57 = vadd.f32 %v1776_v4, %v1358_v56  ;;  %v2012_v58 = vpop.f32.mrb[13].mxu0 }
0x1155   :  { %2244 = vtanh.f32 %v1362_v57  ;;  %v1780_v13 = vmul.f32 -1.442695, %v1362_v57 }
0x1156   :  { %v1433_v9 = vpop.f32.mrb[12].mxu1 }
0x1157   :  { %v1437_v59 = vadd.f32 %v1778_v12, %v1433_v9  ;;  %v2023_v0 = vpop.f32.mrb[13].mxu1 }
0x1159   :  { %2246 = vtanh.f32 %v1437_v59  ;;  %v1781_v61 = vmul.f32 -1.442695, %v1437_v59 }
0x115a   :  { %2248 = vpow2.f32 %v1780_v13 }
0x115b   :  { %2250 = vpow2.f32 %v1781_v61 }
0x115f   :  { %v2245_v60 = vpop.eup %2244 }
0x1160   :  { %1447 = vrot.lane.b32.xlu0 %v2245_v60, %s2279_s19 }
0x1163   :  { %v2247_v8 = vpop.eup %2246 }
0x1164   :  { %1471 = vrot.lane.b32.xlu1 %v2247_v8, %s2279_s19  ;;  %v2249_v62 = vpop.eup %2248 }
0x1165   :  { %v1441_v63 = vadd.f32 1.0, %v2249_v62  ;;  %v2251_v1 = vpop.eup %2250 }
0x1166   :  { %v1465_v2 = vadd.f32 1.0, %v2251_v1 }
0x1167   :  { %2252 = vrcp.f32 %v1441_v63 }
0x1168   :  { %2254 = vrcp.f32 %v1465_v2 }
0x1171   :  { %v2253_v3 = vpop.eup %2252 }
0x1172   :  { %v2255_v7 = vpop.eup %2254  ;;  %v1445_v14 = vmul.f32 %v2253_v3, %v1245_v44 }
0x1173   :  { %v1469_v17 = vmul.f32 %v2255_v7, %v1269_v47 }
0x11d2   :  { %v1448_v5 = vpop.permute.xlu0 %1447 }
0x11d3   :  { %v1450_v6 = vmul.f32 %v2253_v3, %v1448_v5 }
0x11d5   :  { %1452 = vrot.lane.b32.xlu0 %v1450_v6, %s2280_s20 }
0x11d6   :  { %v1472_v10 = vpop.permute.xlu1 %1471 }
0x11d7   :  { %v1474_v11 = vmul.f32 %v2255_v7, %v1472_v10 }
0x11d9   :  { %1476 = vrot.lane.b32.xlu1 %v1474_v11, %s2280_s20 }
0x1247   :  { %v1453_v15 = vpop.permute.xlu0 %1452 }
0x1248   :  { %v1455_v16 = vadd.f32 %v1453_v15, %v1445_v14 }
0x124a   :  { %2256 = vtanh.f32 %v1455_v16 }
0x124b   :  { %v1477_v18 = vpop.permute.xlu1 %1476 }
0x124c   :  { %v1479_v19 = vadd.f32 %v1477_v18, %v1469_v17 }
0x124e   :  { %2258 = vtanh.f32 %v1479_v19 }
0x1254   :  { %v2257_v20 = vpop.eup %2256 }
0x1255   :  { %1458 = vrot.lane.b32.xlu0 %v2257_v20, %s2279_s19 }
0x1258   :  { %v2259_v21 = vpop.eup %2258 }
0x1259   :  { %1482 = vrot.lane.b32.xlu1 %v2259_v21, %s2279_s19 }
0x12c7   :  { %v1459_v22 = vpop.permute.xlu0 %1458 }
0x12c8   :  { %v1461_v23 = vmul.f32 %v2253_v3, %v1459_v22 }
0x12ca   :  { %1487 = vrot.lane.b32.xlu0 %v1461_v23, %s2280_s20 }
0x12cb   :  { %v1483_v24 = vpop.permute.xlu1 %1482 }
0x12cc   :  { %v1485_v25 = vmul.f32 %v2255_v7, %v1483_v24 }
0x12ce   :  { %1493 = vrot.lane.b32.xlu1 %v1485_v25, %s2280_s20 }
0x133c   :  { %v1488_v26 = vpop.permute.xlu0 %1487 }
0x133d   :  { %1782 = vst.msk [vmem:[%s2694_s4 + $0xc] sm:$0x3] %vm230_vm1, %v1488_v26  ;;  %2033 = vmatmul.mubr.msk.f32.vlgmr.msra.gmra.mrb[14].mxu0 %vm30_vm2, %v1488_v26 }
0x1340   :  { %v1494_v27 = vpop.permute.xlu1 %1493 }
0x1341   :  { %1783 = vst.msk [vmem:[%s2695_s5 + $0x2] sm:$0x3] %vm230_vm1, %v1494_v27  ;;  %2044 = vmatmul.mubr.msk.f32.vlgmr.msra.gmra.mrb[14].mxu1 %vm30_vm2, %v1494_v27 }
0x1410   :  { %v1568_v29 = vpop.f32.mrb[14].mxu0 }
0x1411   :  { %v1572_v30 = vadd.f32 %v1784_v28, %v1568_v29  ;;  %v2034_v31 = vpop.f32.mrb[15].mxu0 }
0x1413   :  { %2260 = vtanh.f32 %v1572_v30  ;;  %v1787_v38 = vmul.f32 -1.442695, %v1572_v30 }
0x1414   :  { %v1642_v33 = vpop.f32.mrb[14].mxu1 }
0x1415   :  { %v1646_v34 = vadd.f32 %v1642_v33, %v1573_v32  ;;  %v2045_v35 = vpop.f32.mrb[15].mxu1 }
0x1417   :  { %2262 = vtanh.f32 %v1646_v34  ;;  %v1788_v39 = vmul.f32 -1.442695, %v1646_v34 }
0x1418   :  { %2264 = vpow2.f32 %v1787_v38 }
0x1419   :  { %2266 = vpow2.f32 %v1788_v39 }
0x141d   :  { %v2261_v36 = vpop.eup %2260 }
0x141e   :  { %1656 = vrot.lane.b32.xlu0 %v2261_v36, %s2279_s19 }
0x1421   :  { %v2263_v37 = vpop.eup %2262 }
0x1422   :  { %1680 = vrot.lane.b32.xlu1 %v2263_v37, %s2279_s19  ;;  %v2265_v40 = vpop.eup %2264 }
0x1423   :  { %v1650_v41 = vadd.f32 1.0, %v2265_v40  ;;  %v2267_v42 = vpop.eup %2266 }
0x1424   :  { %v1674_v43 = vadd.f32 1.0, %v2267_v42 }
0x1425   :  { %2268 = vrcp.f32 %v1650_v41 }
0x1426   :  { %2270 = vrcp.f32 %v1674_v43 }
0x142f   :  { %v2269_v44 = vpop.eup %2268 }
0x1430   :  { %v2271_v47 = vpop.eup %2270  ;;  %v1654_v50 = vmul.f32 %v2269_v44, %v1455_v16 }
0x1431   :  { %v1678_v53 = vmul.f32 %v2271_v47, %v1479_v19 }
0x1490   :  { %v1657_v45 = vpop.permute.xlu0 %1656 }
0x1491   :  { %v1659_v46 = vmul.f32 %v2269_v44, %v1657_v45 }
0x1493   :  { %1661 = vrot.lane.b32.xlu0 %v1659_v46, %s2280_s20 }
0x1494   :  { %v1681_v48 = vpop.permute.xlu1 %1680 }
0x1495   :  { %v1683_v49 = vmul.f32 %v2271_v47, %v1681_v48 }
0x1497   :  { %1685 = vrot.lane.b32.xlu1 %v1683_v49, %s2280_s20 }
0x1505   :  { %v1662_v51 = vpop.permute.xlu0 %1661 }
0x1506   :  { %v1664_v52 = vadd.f32 %v1662_v51, %v1654_v50 }
0x1508   :  { %2272 = vtanh.f32 %v1664_v52 }
0x1509   :  { %v1686_v54 = vpop.permute.xlu1 %1685 }
0x150a   :  { %v1688_v55 = vadd.f32 %v1686_v54, %v1678_v53 }
0x150c   :  { %2274 = vtanh.f32 %v1688_v55 }
0x1512   :  { %v2273_v4 = vpop.eup %2272 }
0x1513   :  { %1667 = vrot.lane.b32.xlu0 %v2273_v4, %s2279_s19 }
0x1516   :  { %v2275_v56 = vpop.eup %2274 }
0x1517   :  { %1691 = vrot.lane.b32.xlu1 %v2275_v56, %s2279_s19 }
0x1585   :  { %v1668_v57 = vpop.permute.xlu0 %1667 }
0x1586   :  { %v1670_v58 = vmul.f32 %v2269_v44, %v1668_v57 }
0x1588   :  { %1696 = vrot.lane.b32.xlu0 %v1670_v58, %s2280_s20 }
0x1589   :  { %v1692_v12 = vpop.permute.xlu1 %1691 }
0x158a   :  { %v1694_v9 = vmul.f32 %v2271_v47, %v1692_v12 }
0x158c   :  { %1702 = vrot.lane.b32.xlu1 %v1694_v9, %s2280_s20  ;;  %1707 = vrot.lane.b32.xlu0 %v1664_v52, %s2281_s0 }
0x1590   :  { %1712 = vrot.lane.b32.xlu1 %v1688_v55, %s2281_s0 }
0x15fa   :  { %v1697_v59 = vpop.permute.xlu0 %1696 }
0x15fb   :  { %1789 = vst.msk [vmem:[%s2694_s4 + $0xe] sm:$0x3] %vm230_vm1, %v1697_v59 }
0x15fe   :  { %v1703_v0 = vpop.permute.xlu1 %1702  ;;  %v1708_v60 = vpop.permute.xlu0 %1707 }
0x15ff   :  { %1705 = vst.msk [vmem:[%s2695_s5] sm:$0x3] %vm230_vm1, %v1703_v0  ;;  %1710 = vst.msk [vmem:[%s2696_s6] sm:$0x3] %vm230_vm1, %v1708_v60 }
0x1602   :  { %v1713_v8 = vpop.permute.xlu1 %1712 }
0x1603   :  { %1715 = vst.msk [vmem:[%s2697_s7] sm:$0x3] %vm230_vm1, %v1713_v8 }

</bundles_post_ra>
